<compile_context>
chip_gen: v7x
topology: tpu7x:2x2x1
jax: 0.10.0
libtpu: 0.0.40
codegen_flags: <defaults>
</compile_context>

<pallas_src>
import jax
import jax.numpy as jnp
from jax.experimental import pallas as pl
from jax.experimental.pallas import tpu as pltpu

# ---- synthetic-model config (small BERT-ish encoder; dataset != 'ag' -> 2 labels)
VOCAB = 128
HIDDEN = 32
N_HEADS = 2
HEAD_DIM = HIDDEN // N_HEADS
FFN = 64
N_LAYERS = 2
NUM_LABELS = 2
MAX_POS = 64
LN_EPS = 1e-12
LOGIT_PAD = 128          # lane-dense classifier output width (sliced outside)


# ---------------------------------------------------------------- fused kernel
def _layer_norm(x, g, b):
    mean = jnp.mean(x, axis=-1, keepdims=True)
    var = jnp.mean(jnp.square(x - mean), axis=-1, keepdims=True)
    return (x - mean) * jax.lax.rsqrt(var + LN_EPS) * g + b


def _fused_encoder_kernel(
    x_ref, mask_ref, elng_ref, elnb_ref,
    wqkv_ref, bqkv_ref, wo_ref, bo_ref, ln1g_ref, ln1b_ref,
    w1_ref, b1_ref, w2_ref, b2_ref, ln2g_ref, ln2b_ref,
    poolw_ref, poolb_ref, clsw_ref, clsb_ref,
    out_ref,
):
    bf16 = jnp.bfloat16
    f32 = jnp.float32
    scale = 1.0 / (HEAD_DIM ** 0.5)

    # embedding LayerNorm (no residual -> no zero tensor DMA'd from HBM)
    x = _layer_norm(x_ref[...], elng_ref[...], elnb_ref[...])          # [S, H] f32
    mask = mask_ref[0]                                                 # [1, S] additive

    for l in range(N_LAYERS):                                          # weights stay in VMEM
        # -------- fused Q|K|V projection: one MXU launch, 3H output lanes
        qkv = jnp.dot(x.astype(bf16), wqkv_ref[l],
                      preferred_element_type=f32) + bqkv_ref[l]        # [S, 3H]

        ctx_parts = []
        for h in range(N_HEADS):
            qh = qkv[:, h * HEAD_DIM:(h + 1) * HEAD_DIM]
            kh = qkv[:, HIDDEN + h * HEAD_DIM:HIDDEN + (h + 1) * HEAD_DIM]
            vh = qkv[:, 2 * HIDDEN + h * HEAD_DIM:2 * HIDDEN + (h + 1) * HEAD_DIM]
            # q . k^T via dot_general contracting the last dims (no k.T materialized)
            s = jax.lax.dot_general(
                qh.astype(bf16), kh.astype(bf16),
                (((1,), (1,)), ((), ())),
                preferred_element_type=f32) * scale                    # [S, S] f32
            s = s + mask                                               # key-padding mask
            p = jnp.exp(s - jnp.max(s, axis=-1, keepdims=True))
            denom = jnp.sum(p, axis=-1, keepdims=True)
            p = p * pl.reciprocal(denom, approx=True)                  # EUP, not VPU divide
            ctx_parts.append(
                jnp.dot(p.astype(bf16), vh.astype(bf16),
                        preferred_element_type=f32))                   # [S, dH]
        ctx = jnp.concatenate(ctx_parts, axis=-1)                      # [S, H]

        # -------- attention output projection + residual LayerNorm
        attn = jnp.dot(ctx.astype(bf16), wo_ref[l],
                       preferred_element_type=f32) + bo_ref[l]
        x = _layer_norm(attn + x, ln1g_ref[l], ln1b_ref[l])

        # -------- FFN (bias + GELU fused) + residual LayerNorm
        ff = jnp.dot(x.astype(bf16), w1_ref[l],
                     preferred_element_type=f32) + b1_ref[l]
        # TODO(synk): HF BERT default GELU is the exact erf form; tanh approx here.
        ff = jax.nn.gelu(ff, approximate=True)
        ff = jnp.dot(ff.astype(bf16), w2_ref[l],
                     preferred_element_type=f32) + b2_ref[l]
        x = _layer_norm(ff + x, ln2g_ref[l], ln2b_ref[l])

    # -------- pooler (tanh) + classifier; computed on all S rows (rows are
    # independent) and the [CLS] row (row 0 of this batch block) is stored.
    pooled = jnp.tanh(jnp.dot(x.astype(bf16), poolw_ref[...],
                              preferred_element_type=f32) + poolb_ref[...])   # [S, H]
    logits = jnp.dot(pooled.astype(bf16), clsw_ref[...],
                     preferred_element_type=f32) + clsb_ref[...]              # [S, 128]
    out_ref[0] = logits[0:1, :]                                               # lane-dense store


def _fused_forward(x_emb, mask_add, pk):
    """x_emb: [B*S, H] f32; mask_add: [B, 1, S] f32 additive mask."""
    BS, H = x_emb.shape
    B = mask_add.shape[0]
    S = BS // B

    def full(a):
        nd = a.ndim
        return pl.BlockSpec(a.shape, lambda b, _nd=nd: (0,) * _nd)

    weights = [
        pk["emb_ln_g"], pk["emb_ln_b"],
        pk["wqkv"], pk["bqkv"], pk["wo"], pk["bo"], pk["ln1_g"], pk["ln1_b"],
        pk["w1"], pk["b1"], pk["w2"], pk["b2"], pk["ln2_g"], pk["ln2_b"],
        pk["pool_w"], pk["pool_b"], pk["cls_w"], pk["cls_b"],
    ]
    in_specs = [
        pl.BlockSpec((S, H), lambda b: (b, 0)),          # this batch's token rows
        pl.BlockSpec((1, 1, S), lambda b: (b, 0, 0)),    # this batch's mask
    ] + [full(w) for w in weights]

    logits_pad = pl.pallas_call(
        _fused_encoder_kernel,
        out_shape=jax.ShapeDtypeStruct((B, 1, LOGIT_PAD), jnp.float32),
        grid=(B,),
        in_specs=in_specs,
        out_specs=pl.BlockSpec((1, 1, LOGIT_PAD), lambda b: (b, 0, 0)),
        compiler_params=pltpu.CompilerParams(
            dimension_semantics=("parallel",)),          # v7x: one batch per TensorCore
    )(x_emb, mask_add, *weights)
    return logits_pad[:, 0, :NUM_LABELS]


# ---------------------------------------------------------------- params / model
def init_params(key):
    def nrm(k, shape):
        return 0.02 * jax.random.normal(k, shape, jnp.float32)

    keys = jax.random.split(key, 8 + N_LAYERS)
    p = {
        "word_emb": nrm(keys[0], (VOCAB, HIDDEN)),
        "pos_emb": nrm(keys[1], (MAX_POS, HIDDEN)),
        "type_emb": nrm(keys[2], (2, HIDDEN)),
        "emb_ln_g": jnp.ones((HIDDEN,), jnp.float32),
        "emb_ln_b": jnp.zeros((HIDDEN,), jnp.float32),
        "pool_w": nrm(keys[3], (HIDDEN, HIDDEN)),
        "pool_b": jnp.zeros((HIDDEN,), jnp.float32),
        "cls_w": nrm(keys[4], (HIDDEN, NUM_LABELS)),
        "cls_b": jnp.zeros((NUM_LABELS,), jnp.float32),
        "layers": [],
    }
    for l in range(N_LAYERS):
        lk = jax.random.split(keys[8 + l], 6)
        p["layers"].append({
            "wq": nrm(lk[0], (HIDDEN, HIDDEN)), "bq": jnp.zeros((HIDDEN,), jnp.float32),
            "wk": nrm(lk[1], (HIDDEN, HIDDEN)), "bk": jnp.zeros((HIDDEN,), jnp.float32),
            "wv": nrm(lk[2], (HIDDEN, HIDDEN)), "bv": jnp.zeros((HIDDEN,), jnp.float32),
            "wo": nrm(lk[3], (HIDDEN, HIDDEN)), "bo": jnp.zeros((HIDDEN,), jnp.float32),
            "w1": nrm(lk[4], (HIDDEN, FFN)),    "b1": jnp.zeros((FFN,), jnp.float32),
            "w2": nrm(lk[5], (FFN, HIDDEN)),    "b2": jnp.zeros((HIDDEN,), jnp.float32),
            "ln1_g": jnp.ones((HIDDEN,), jnp.float32),
            "ln1_b": jnp.zeros((HIDDEN,), jnp.float32),
            "ln2_g": jnp.ones((HIDDEN,), jnp.float32),
            "ln2_b": jnp.zeros((HIDDEN,), jnp.float32),
        })
    return p


def pack_params(p):
    """Stack per-layer weights (leading layer axis), fuse Q|K|V, cast matmul
    weights to bf16, pad the classifier to a 128-lane-dense slab."""
    bf16, f32 = jnp.bfloat16, jnp.float32
    ls = p["layers"]
    stack_w = lambda name: jnp.stack([l[name] for l in ls]).astype(bf16)
    stack_v = lambda name: jnp.stack([l[name][None, :] for l in ls]).astype(f32)
    return {
        "word_emb": p["word_emb"], "pos_emb": p["pos_emb"], "type_emb": p["type_emb"],
        "emb_ln_g": p["emb_ln_g"].reshape(1, HIDDEN).astype(f32),
        "emb_ln_b": p["emb_ln_b"].reshape(1, HIDDEN).astype(f32),
        "wqkv": jnp.stack([jnp.concatenate([l["wq"], l["wk"], l["wv"]], axis=1)
                           for l in ls]).astype(bf16),                       # [L, H, 3H]
        "bqkv": jnp.stack([jnp.concatenate([l["bq"], l["bk"], l["bv"]])[None, :]
                           for l in ls]).astype(f32),                        # [L, 1, 3H]
        "wo": stack_w("wo"), "bo": stack_v("bo"),
        "ln1_g": stack_v("ln1_g"), "ln1_b": stack_v("ln1_b"),
        "w1": stack_w("w1"), "b1": stack_v("b1"),
        "w2": stack_w("w2"), "b2": stack_v("b2"),
        "ln2_g": stack_v("ln2_g"), "ln2_b": stack_v("ln2_b"),
        "pool_w": p["pool_w"].astype(bf16),
        "pool_b": p["pool_b"].reshape(1, HIDDEN).astype(f32),
        "cls_w": jnp.zeros((HIDDEN, LOGIT_PAD), f32)
                    .at[:, :NUM_LABELS].set(p["cls_w"]).astype(bf16),
        "cls_b": jnp.zeros((1, LOGIT_PAD), f32).at[0, :NUM_LABELS].set(p["cls_b"]),
    }


def victim_forward(pk, padded_text, attention_masks):
    """Equivalent of VICTIM.forward(padded_text, attention_masks) -> logits."""
    B, S = padded_text.shape
    # embedding gathers are host/XLA glue; everything after runs in one Pallas call
    we = jnp.take(pk["word_emb"], padded_text, axis=0)                 # [B, S, H]
    pe = pk["pos_emb"][:S][None, :, :]
    te = pk["type_emb"][0][None, None, :]                              # token_type_ids = 0
    x_emb = (we + pe + te).astype(jnp.float32).reshape(B * S, HIDDEN)
    mask_add = ((1.0 - attention_masks.astype(jnp.float32)) * -1e9).reshape(B, 1, S)
    return _fused_forward(x_emb, mask_add, pk)


if __name__ == "__main__":
    key = jax.random.PRNGKey(0)
    kp, kt = jax.random.split(key)
    params = pack_params(init_params(kp))

    B, S = 2, 8
    padded_text = jax.random.randint(kt, (B, S), 0, VOCAB, dtype=jnp.int32)
    attention_masks = jnp.array([[1] * S, [1] * (S - 2) + [0] * 2], dtype=jnp.int32)

    fwd = jax.jit(victim_forward)
    logits = fwd(params, padded_text, attention_masks)
    jax.block_until_ready(logits)
    assert logits.shape == (B, NUM_LABELS) and logits.dtype == jnp.float32
    print("KERNEL_OK")
</pallas_src>

<mosaic_0001>
module attributes {stable_mosaic.version = 11 : i64} {
  func.func @_fused_encoder_kernel(%arg0: i32, %arg1: memref<8x32xf32, #tpu.memory_space<vmem>>, %arg2: memref<1x1x8xf32, #tpu.memory_space<vmem>>, %arg3: memref<1x32xf32, #tpu.memory_space<vmem>>, %arg4: memref<1x32xf32, #tpu.memory_space<vmem>>, %arg5: memref<2x32x96xbf16, #tpu.memory_space<vmem>>, %arg6: memref<2x1x96xf32, #tpu.memory_space<vmem>>, %arg7: memref<2x32x32xbf16, #tpu.memory_space<vmem>>, %arg8: memref<2x1x32xf32, #tpu.memory_space<vmem>>, %arg9: memref<2x1x32xf32, #tpu.memory_space<vmem>>, %arg10: memref<2x1x32xf32, #tpu.memory_space<vmem>>, %arg11: memref<2x32x64xbf16, #tpu.memory_space<vmem>>, %arg12: memref<2x1x64xf32, #tpu.memory_space<vmem>>, %arg13: memref<2x64x32xbf16, #tpu.memory_space<vmem>>, %arg14: memref<2x1x32xf32, #tpu.memory_space<vmem>>, %arg15: memref<2x1x32xf32, #tpu.memory_space<vmem>>, %arg16: memref<2x1x32xf32, #tpu.memory_space<vmem>>, %arg17: memref<32x32xbf16, #tpu.memory_space<vmem>>, %arg18: memref<1x32xf32, #tpu.memory_space<vmem>>, %arg19: memref<32x128xbf16, #tpu.memory_space<vmem>>, %arg20: memref<1x128xf32, #tpu.memory_space<vmem>>, %arg21: memref<1x1x128xf32, #tpu.memory_space<vmem>>) attributes {dimension_semantics = [#tpu.dimension_semantics<parallel>], iteration_bounds = array<i64: 2>, scalar_prefetch = 0 : i64, scratch_operands = 0 : i64, tpu.core_type = #tpu.core_type<tc>, window_params = [{transform_indices = @transform_0, window_bounds = array<i64: 8, 32>}, {transform_indices = @transform_1, window_bounds = array<i64: 1, 1, 8>}, {pipeline_mode = #tpu.pipeline_mode<synchronous>, transform_indices = @transform_2, window_bounds = array<i64: 1, 32>}, {pipeline_mode = #tpu.pipeline_mode<synchronous>, transform_indices = @transform_3, window_bounds = array<i64: 1, 32>}, {pipeline_mode = #tpu.pipeline_mode<synchronous>, transform_indices = @transform_4, window_bounds = array<i64: 2, 32, 96>}, {pipeline_mode = #tpu.pipeline_mode<synchronous>, transform_indices = @transform_5, window_bounds = array<i64: 2, 1, 96>}, {pipeline_mode = #tpu.pipeline_mode<synchronous>, transform_indices = @transform_6, window_bounds = array<i64: 2, 32, 32>}, {pipeline_mode = #tpu.pipeline_mode<synchronous>, transform_indices = @transform_7, window_bounds = array<i64: 2, 1, 32>}, {pipeline_mode = #tpu.pipeline_mode<synchronous>, transform_indices = @transform_8, window_bounds = array<i64: 2, 1, 32>}, {pipeline_mode = #tpu.pipeline_mode<synchronous>, transform_indices = @transform_9, window_bounds = array<i64: 2, 1, 32>}, {pipeline_mode = #tpu.pipeline_mode<synchronous>, transform_indices = @transform_10, window_bounds = array<i64: 2, 32, 64>}, {pipeline_mode = #tpu.pipeline_mode<synchronous>, transform_indices = @transform_11, window_bounds = array<i64: 2, 1, 64>}, {pipeline_mode = #tpu.pipeline_mode<synchronous>, transform_indices = @transform_12, window_bounds = array<i64: 2, 64, 32>}, {pipeline_mode = #tpu.pipeline_mode<synchronous>, transform_indices = @transform_13, window_bounds = array<i64: 2, 1, 32>}, {pipeline_mode = #tpu.pipeline_mode<synchronous>, transform_indices = @transform_14, window_bounds = array<i64: 2, 1, 32>}, {pipeline_mode = #tpu.pipeline_mode<synchronous>, transform_indices = @transform_15, window_bounds = array<i64: 2, 1, 32>}, {pipeline_mode = #tpu.pipeline_mode<synchronous>, transform_indices = @transform_16, window_bounds = array<i64: 32, 32>}, {pipeline_mode = #tpu.pipeline_mode<synchronous>, transform_indices = @transform_17, window_bounds = array<i64: 1, 32>}, {pipeline_mode = #tpu.pipeline_mode<synchronous>, transform_indices = @transform_18, window_bounds = array<i64: 32, 128>}, {pipeline_mode = #tpu.pipeline_mode<synchronous>, transform_indices = @transform_19, window_bounds = array<i64: 1, 128>}, {transform_indices = @transform_20, window_bounds = array<i64: 1, 1, 128>}]} {
    %c0 = arith.constant 0 : index
    %c0_0 = arith.constant 0 : index
    %0 = vector.load %arg1[%c0, %c0_0] : memref<8x32xf32, #tpu.memory_space<vmem>>, vector<8x32xf32>
    %c0_1 = arith.constant 0 : index
    %c0_2 = arith.constant 0 : index
    %1 = vector.load %arg3[%c0_1, %c0_2] : memref<1x32xf32, #tpu.memory_space<vmem>>, vector<1x32xf32>
    %c0_3 = arith.constant 0 : index
    %c0_4 = arith.constant 0 : index
    %2 = vector.load %arg4[%c0_3, %c0_4] : memref<1x32xf32, #tpu.memory_space<vmem>>, vector<1x32xf32>
    %cst = arith.constant dense<0.000000e+00> : vector<8xf32>
    %3 = vector.multi_reduction <add>, %0, %cst [1] : vector<8x32xf32> to vector<8xf32>
    %4 = vector.shape_cast %3 : vector<8xf32> to vector<8x1xf32>
    %cst_5 = arith.constant 3.200000e+01 : f32
    %5 = vector.broadcast %cst_5 : f32 to vector<8x1xf32>
    %6 = arith.divf %4, %5 : vector<8x1xf32>
    %7 = vector.broadcast %6 : vector<8x1xf32> to vector<8x32xf32>
    %8 = arith.subf %0, %7 : vector<8x32xf32>
    %9 = arith.mulf %8, %8 : vector<8x32xf32>
    %cst_6 = arith.constant dense<0.000000e+00> : vector<8xf32>
    %10 = vector.multi_reduction <add>, %9, %cst_6 [1] : vector<8x32xf32> to vector<8xf32>
    %11 = vector.shape_cast %10 : vector<8xf32> to vector<8x1xf32>
    %cst_7 = arith.constant 3.200000e+01 : f32
    %12 = vector.broadcast %cst_7 : f32 to vector<8x1xf32>
    %13 = arith.divf %11, %12 : vector<8x1xf32>
    %14 = vector.broadcast %6 : vector<8x1xf32> to vector<8x32xf32>
    %15 = arith.subf %0, %14 : vector<8x32xf32>
    %cst_8 = arith.constant 9.99999996E-13 : f32
    %16 = vector.broadcast %cst_8 : f32 to vector<8x1xf32>
    %17 = arith.addf %13, %16 : vector<8x1xf32>
    %18 = math.rsqrt %17 : vector<8x1xf32>
    %19 = vector.broadcast %18 : vector<8x1xf32> to vector<8x32xf32>
    %20 = arith.mulf %15, %19 : vector<8x32xf32>
    %21 = vector.broadcast %1 : vector<1x32xf32> to vector<8x32xf32>
    %22 = arith.mulf %20, %21 : vector<8x32xf32>
    %23 = vector.broadcast %2 : vector<1x32xf32> to vector<8x32xf32>
    %24 = arith.addf %22, %23 : vector<8x32xf32>
    %c0_9 = arith.constant 0 : index
    %c0_10 = arith.constant 0 : index
    %c0_11 = arith.constant 0 : index
    %25 = vector.load %arg2[%c0_9, %c0_10, %c0_11] : memref<1x1x8xf32, #tpu.memory_space<vmem>>, vector<1x1x8xf32>
    %26 = vector.shape_cast %25 : vector<1x1x8xf32> to vector<1x8xf32>
    %27 = arith.truncf %24 : vector<8x32xf32> to vector<8x32xbf16>
    %c0_12 = arith.constant 0 : index
    %c0_13 = arith.constant 0 : index
    %c0_14 = arith.constant 0 : index
    %28 = vector.load %arg5[%c0_12, %c0_13, %c0_14] : memref<2x32x96xbf16, #tpu.memory_space<vmem>>, vector<1x32x96xbf16>
    %29 = vector.shape_cast %28 : vector<1x32x96xbf16> to vector<32x96xbf16>
    %cst_15 = arith.constant dense<0.000000e+00> : vector<8x96xf32>
    %30 = tpu.matmul %27, %29, %cst_15 {dimension_numbers = #tpu.dot_dimension_numbers<[1], [0], [0], [1], [0, 0, 1, 1], [], []>} : vector<8x32xbf16>, vector<32x96xbf16>, vector<8x96xf32> -> vector<8x96xf32>
    %c0_16 = arith.constant 0 : index
    %c0_17 = arith.constant 0 : index
    %c0_18 = arith.constant 0 : index
    %31 = vector.load %arg6[%c0_16, %c0_17, %c0_18] : memref<2x1x96xf32, #tpu.memory_space<vmem>>, vector<1x1x96xf32>
    %32 = vector.shape_cast %31 : vector<1x1x96xf32> to vector<1x96xf32>
    %33 = vector.broadcast %32 : vector<1x96xf32> to vector<8x96xf32>
    %34 = arith.addf %30, %33 : vector<8x96xf32>
    %35 = vector.extract_strided_slice %34 {offsets = [0, 0], sizes = [8, 16], strides = [1, 1]} : vector<8x96xf32> to vector<8x16xf32>
    %36 = vector.extract_strided_slice %34 {offsets = [0, 32], sizes = [8, 16], strides = [1, 1]} : vector<8x96xf32> to vector<8x16xf32>
    %37 = vector.extract_strided_slice %34 {offsets = [0, 64], sizes = [8, 16], strides = [1, 1]} : vector<8x96xf32> to vector<8x16xf32>
    %38 = arith.truncf %35 : vector<8x16xf32> to vector<8x16xbf16>
    %39 = arith.truncf %36 : vector<8x16xf32> to vector<8x16xbf16>
    %cst_19 = arith.constant dense<0.000000e+00> : vector<8x8xf32>
    %40 = tpu.matmul %38, %39, %cst_19 {dimension_numbers = #tpu.dot_dimension_numbers<[1], [1], [0], [0], [0, 0, 1, 0], [], []>} : vector<8x16xbf16>, vector<8x16xbf16>, vector<8x8xf32> -> vector<8x8xf32>
    %cst_20 = arith.constant 2.500000e-01 : f32
    %41 = vector.broadcast %cst_20 : f32 to vector<8x8xf32>
    %42 = arith.mulf %40, %41 : vector<8x8xf32>
    %43 = vector.broadcast %26 : vector<1x8xf32> to vector<8x8xf32>
    %44 = arith.addf %42, %43 : vector<8x8xf32>
    %cst_21 = arith.constant dense<0xFF800000> : vector<8xf32>
    %45 = vector.multi_reduction <maximumf>, %44, %cst_21 [1] : vector<8x8xf32> to vector<8xf32>
    %46 = vector.shape_cast %45 : vector<8xf32> to vector<8x1xf32>
    %47 = vector.broadcast %46 : vector<8x1xf32> to vector<8x8xf32>
    %48 = arith.subf %44, %47 : vector<8x8xf32>
    %49 = math.exp %48 : vector<8x8xf32>
    %cst_22 = arith.constant dense<0.000000e+00> : vector<8xf32>
    %50 = vector.multi_reduction <add>, %49, %cst_22 [1] : vector<8x8xf32> to vector<8xf32>
    %51 = vector.shape_cast %50 : vector<8xf32> to vector<8x1xf32>
    %52 = tpu.reciprocal %51 {approx = true} : vector<8x1xf32> -> vector<8x1xf32>
    %53 = vector.broadcast %52 : vector<8x1xf32> to vector<8x8xf32>
    %54 = arith.mulf %49, %53 : vector<8x8xf32>
    %55 = arith.truncf %54 : vector<8x8xf32> to vector<8x8xbf16>
    %56 = arith.truncf %37 : vector<8x16xf32> to vector<8x16xbf16>
    %cst_23 = arith.constant dense<0.000000e+00> : vector<8x16xf32>
    %57 = tpu.matmul %55, %56, %cst_23 {dimension_numbers = #tpu.dot_dimension_numbers<[1], [0], [0], [1], [0, 0, 1, 1], [], []>} : vector<8x8xbf16>, vector<8x16xbf16>, vector<8x16xf32> -> vector<8x16xf32>
    %58 = vector.extract_strided_slice %34 {offsets = [0, 16], sizes = [8, 16], strides = [1, 1]} : vector<8x96xf32> to vector<8x16xf32>
    %59 = vector.extract_strided_slice %34 {offsets = [0, 48], sizes = [8, 16], strides = [1, 1]} : vector<8x96xf32> to vector<8x16xf32>
    %60 = vector.extract_strided_slice %34 {offsets = [0, 80], sizes = [8, 16], strides = [1, 1]} : vector<8x96xf32> to vector<8x16xf32>
    %61 = arith.truncf %58 : vector<8x16xf32> to vector<8x16xbf16>
    %62 = arith.truncf %59 : vector<8x16xf32> to vector<8x16xbf16>
    %cst_24 = arith.constant dense<0.000000e+00> : vector<8x8xf32>
    %63 = tpu.matmul %61, %62, %cst_24 {dimension_numbers = #tpu.dot_dimension_numbers<[1], [1], [0], [0], [0, 0, 1, 0], [], []>} : vector<8x16xbf16>, vector<8x16xbf16>, vector<8x8xf32> -> vector<8x8xf32>
    %cst_25 = arith.constant 2.500000e-01 : f32
    %64 = vector.broadcast %cst_25 : f32 to vector<8x8xf32>
    %65 = arith.mulf %63, %64 : vector<8x8xf32>
    %66 = vector.broadcast %26 : vector<1x8xf32> to vector<8x8xf32>
    %67 = arith.addf %65, %66 : vector<8x8xf32>
    %cst_26 = arith.constant dense<0xFF800000> : vector<8xf32>
    %68 = vector.multi_reduction <maximumf>, %67, %cst_26 [1] : vector<8x8xf32> to vector<8xf32>
    %69 = vector.shape_cast %68 : vector<8xf32> to vector<8x1xf32>
    %70 = vector.broadcast %69 : vector<8x1xf32> to vector<8x8xf32>
    %71 = arith.subf %67, %70 : vector<8x8xf32>
    %72 = math.exp %71 : vector<8x8xf32>
    %cst_27 = arith.constant dense<0.000000e+00> : vector<8xf32>
    %73 = vector.multi_reduction <add>, %72, %cst_27 [1] : vector<8x8xf32> to vector<8xf32>
    %74 = vector.shape_cast %73 : vector<8xf32> to vector<8x1xf32>
    %75 = tpu.reciprocal %74 {approx = true} : vector<8x1xf32> -> vector<8x1xf32>
    %76 = vector.broadcast %75 : vector<8x1xf32> to vector<8x8xf32>
    %77 = arith.mulf %72, %76 : vector<8x8xf32>
    %78 = arith.truncf %77 : vector<8x8xf32> to vector<8x8xbf16>
    %79 = arith.truncf %60 : vector<8x16xf32> to vector<8x16xbf16>
    %cst_28 = arith.constant dense<0.000000e+00> : vector<8x16xf32>
    %80 = tpu.matmul %78, %79, %cst_28 {dimension_numbers = #tpu.dot_dimension_numbers<[1], [0], [0], [1], [0, 0, 1, 1], [], []>} : vector<8x8xbf16>, vector<8x16xbf16>, vector<8x16xf32> -> vector<8x16xf32>
    %81 = tpu.concatenate %57, %80 in 1 : vector<8x16xf32>, vector<8x16xf32> -> vector<8x32xf32>
    %82 = arith.truncf %81 : vector<8x32xf32> to vector<8x32xbf16>
    %c0_29 = arith.constant 0 : index
    %c0_30 = arith.constant 0 : index
    %c0_31 = arith.constant 0 : index
    %83 = vector.load %arg7[%c0_29, %c0_30, %c0_31] : memref<2x32x32xbf16, #tpu.memory_space<vmem>>, vector<1x32x32xbf16>
    %84 = vector.shape_cast %83 : vector<1x32x32xbf16> to vector<32x32xbf16>
    %cst_32 = arith.constant dense<0.000000e+00> : vector<8x32xf32>
    %85 = tpu.matmul %82, %84, %cst_32 {dimension_numbers = #tpu.dot_dimension_numbers<[1], [0], [0], [1], [0, 0, 1, 1], [], []>} : vector<8x32xbf16>, vector<32x32xbf16>, vector<8x32xf32> -> vector<8x32xf32>
    %c0_33 = arith.constant 0 : index
    %c0_34 = arith.constant 0 : index
    %c0_35 = arith.constant 0 : index
    %86 = vector.load %arg8[%c0_33, %c0_34, %c0_35] : memref<2x1x32xf32, #tpu.memory_space<vmem>>, vector<1x1x32xf32>
    %87 = vector.shape_cast %86 : vector<1x1x32xf32> to vector<1x32xf32>
    %88 = vector.broadcast %87 : vector<1x32xf32> to vector<8x32xf32>
    %89 = arith.addf %85, %88 : vector<8x32xf32>
    %90 = arith.addf %89, %24 : vector<8x32xf32>
    %c0_36 = arith.constant 0 : index
    %c0_37 = arith.constant 0 : index
    %c0_38 = arith.constant 0 : index
    %91 = vector.load %arg9[%c0_36, %c0_37, %c0_38] : memref<2x1x32xf32, #tpu.memory_space<vmem>>, vector<1x1x32xf32>
    %92 = vector.shape_cast %91 : vector<1x1x32xf32> to vector<1x32xf32>
    %c0_39 = arith.constant 0 : index
    %c0_40 = arith.constant 0 : index
    %c0_41 = arith.constant 0 : index
    %93 = vector.load %arg10[%c0_39, %c0_40, %c0_41] : memref<2x1x32xf32, #tpu.memory_space<vmem>>, vector<1x1x32xf32>
    %94 = vector.shape_cast %93 : vector<1x1x32xf32> to vector<1x32xf32>
    %cst_42 = arith.constant dense<0.000000e+00> : vector<8xf32>
    %95 = vector.multi_reduction <add>, %90, %cst_42 [1] : vector<8x32xf32> to vector<8xf32>
    %96 = vector.shape_cast %95 : vector<8xf32> to vector<8x1xf32>
    %cst_43 = arith.constant 3.200000e+01 : f32
    %97 = vector.broadcast %cst_43 : f32 to vector<8x1xf32>
    %98 = arith.divf %96, %97 : vector<8x1xf32>
    %99 = vector.broadcast %98 : vector<8x1xf32> to vector<8x32xf32>
    %100 = arith.subf %90, %99 : vector<8x32xf32>
    %101 = arith.mulf %100, %100 : vector<8x32xf32>
    %cst_44 = arith.constant dense<0.000000e+00> : vector<8xf32>
    %102 = vector.multi_reduction <add>, %101, %cst_44 [1] : vector<8x32xf32> to vector<8xf32>
    %103 = vector.shape_cast %102 : vector<8xf32> to vector<8x1xf32>
    %cst_45 = arith.constant 3.200000e+01 : f32
    %104 = vector.broadcast %cst_45 : f32 to vector<8x1xf32>
    %105 = arith.divf %103, %104 : vector<8x1xf32>
    %106 = vector.broadcast %98 : vector<8x1xf32> to vector<8x32xf32>
    %107 = arith.subf %90, %106 : vector<8x32xf32>
    %cst_46 = arith.constant 9.99999996E-13 : f32
    %108 = vector.broadcast %cst_46 : f32 to vector<8x1xf32>
    %109 = arith.addf %105, %108 : vector<8x1xf32>
    %110 = math.rsqrt %109 : vector<8x1xf32>
    %111 = vector.broadcast %110 : vector<8x1xf32> to vector<8x32xf32>
    %112 = arith.mulf %107, %111 : vector<8x32xf32>
    %113 = vector.broadcast %92 : vector<1x32xf32> to vector<8x32xf32>
    %114 = arith.mulf %112, %113 : vector<8x32xf32>
    %115 = vector.broadcast %94 : vector<1x32xf32> to vector<8x32xf32>
    %116 = arith.addf %114, %115 : vector<8x32xf32>
    %117 = arith.truncf %116 : vector<8x32xf32> to vector<8x32xbf16>
    %c0_47 = arith.constant 0 : index
    %c0_48 = arith.constant 0 : index
    %c0_49 = arith.constant 0 : index
    %118 = vector.load %arg11[%c0_47, %c0_48, %c0_49] : memref<2x32x64xbf16, #tpu.memory_space<vmem>>, vector<1x32x64xbf16>
    %119 = vector.shape_cast %118 : vector<1x32x64xbf16> to vector<32x64xbf16>
    %cst_50 = arith.constant dense<0.000000e+00> : vector<8x64xf32>
    %120 = tpu.matmul %117, %119, %cst_50 {dimension_numbers = #tpu.dot_dimension_numbers<[1], [0], [0], [1], [0, 0, 1, 1], [], []>} : vector<8x32xbf16>, vector<32x64xbf16>, vector<8x64xf32> -> vector<8x64xf32>
    %c0_51 = arith.constant 0 : index
    %c0_52 = arith.constant 0 : index
    %c0_53 = arith.constant 0 : index
    %121 = vector.load %arg12[%c0_51, %c0_52, %c0_53] : memref<2x1x64xf32, #tpu.memory_space<vmem>>, vector<1x1x64xf32>
    %122 = vector.shape_cast %121 : vector<1x1x64xf32> to vector<1x64xf32>
    %123 = vector.broadcast %122 : vector<1x64xf32> to vector<8x64xf32>
    %124 = arith.addf %120, %123 : vector<8x64xf32>
    %125 = arith.mulf %124, %124 : vector<8x64xf32>
    %126 = arith.mulf %124, %125 : vector<8x64xf32>
    %cst_54 = arith.constant 4.471500e-02 : f32
    %127 = vector.broadcast %cst_54 : f32 to vector<8x64xf32>
    %128 = arith.mulf %127, %126 : vector<8x64xf32>
    %129 = arith.addf %124, %128 : vector<8x64xf32>
    %cst_55 = arith.constant 0.797884583 : f32
    %130 = vector.broadcast %cst_55 : f32 to vector<8x64xf32>
    %131 = arith.mulf %130, %129 : vector<8x64xf32>
    %132 = math.tanh %131 : vector<8x64xf32>
    %cst_56 = arith.constant 1.000000e+00 : f32
    %133 = vector.broadcast %cst_56 : f32 to vector<8x64xf32>
    %134 = arith.addf %133, %132 : vector<8x64xf32>
    %cst_57 = arith.constant 5.000000e-01 : f32
    %135 = vector.broadcast %cst_57 : f32 to vector<8x64xf32>
    %136 = arith.mulf %135, %134 : vector<8x64xf32>
    %137 = arith.mulf %124, %136 : vector<8x64xf32>
    %138 = arith.truncf %137 : vector<8x64xf32> to vector<8x64xbf16>
    %c0_58 = arith.constant 0 : index
    %c0_59 = arith.constant 0 : index
    %c0_60 = arith.constant 0 : index
    %139 = vector.load %arg13[%c0_58, %c0_59, %c0_60] : memref<2x64x32xbf16, #tpu.memory_space<vmem>>, vector<1x64x32xbf16>
    %140 = vector.shape_cast %139 : vector<1x64x32xbf16> to vector<64x32xbf16>
    %cst_61 = arith.constant dense<0.000000e+00> : vector<8x32xf32>
    %141 = tpu.matmul %138, %140, %cst_61 {dimension_numbers = #tpu.dot_dimension_numbers<[1], [0], [0], [1], [0, 0, 1, 1], [], []>} : vector<8x64xbf16>, vector<64x32xbf16>, vector<8x32xf32> -> vector<8x32xf32>
    %c0_62 = arith.constant 0 : index
    %c0_63 = arith.constant 0 : index
    %c0_64 = arith.constant 0 : index
    %142 = vector.load %arg14[%c0_62, %c0_63, %c0_64] : memref<2x1x32xf32, #tpu.memory_space<vmem>>, vector<1x1x32xf32>
    %143 = vector.shape_cast %142 : vector<1x1x32xf32> to vector<1x32xf32>
    %144 = vector.broadcast %143 : vector<1x32xf32> to vector<8x32xf32>
    %145 = arith.addf %141, %144 : vector<8x32xf32>
    %146 = arith.addf %145, %116 : vector<8x32xf32>
    %c0_65 = arith.constant 0 : index
    %c0_66 = arith.constant 0 : index
    %c0_67 = arith.constant 0 : index
    %147 = vector.load %arg15[%c0_65, %c0_66, %c0_67] : memref<2x1x32xf32, #tpu.memory_space<vmem>>, vector<1x1x32xf32>
    %148 = vector.shape_cast %147 : vector<1x1x32xf32> to vector<1x32xf32>
    %c0_68 = arith.constant 0 : index
    %c0_69 = arith.constant 0 : index
    %c0_70 = arith.constant 0 : index
    %149 = vector.load %arg16[%c0_68, %c0_69, %c0_70] : memref<2x1x32xf32, #tpu.memory_space<vmem>>, vector<1x1x32xf32>
    %150 = vector.shape_cast %149 : vector<1x1x32xf32> to vector<1x32xf32>
    %cst_71 = arith.constant dense<0.000000e+00> : vector<8xf32>
    %151 = vector.multi_reduction <add>, %146, %cst_71 [1] : vector<8x32xf32> to vector<8xf32>
    %152 = vector.shape_cast %151 : vector<8xf32> to vector<8x1xf32>
    %cst_72 = arith.constant 3.200000e+01 : f32
    %153 = vector.broadcast %cst_72 : f32 to vector<8x1xf32>
    %154 = arith.divf %152, %153 : vector<8x1xf32>
    %155 = vector.broadcast %154 : vector<8x1xf32> to vector<8x32xf32>
    %156 = arith.subf %146, %155 : vector<8x32xf32>
    %157 = arith.mulf %156, %156 : vector<8x32xf32>
    %cst_73 = arith.constant dense<0.000000e+00> : vector<8xf32>
    %158 = vector.multi_reduction <add>, %157, %cst_73 [1] : vector<8x32xf32> to vector<8xf32>
    %159 = vector.shape_cast %158 : vector<8xf32> to vector<8x1xf32>
    %cst_74 = arith.constant 3.200000e+01 : f32
    %160 = vector.broadcast %cst_74 : f32 to vector<8x1xf32>
    %161 = arith.divf %159, %160 : vector<8x1xf32>
    %162 = vector.broadcast %154 : vector<8x1xf32> to vector<8x32xf32>
    %163 = arith.subf %146, %162 : vector<8x32xf32>
    %cst_75 = arith.constant 9.99999996E-13 : f32
    %164 = vector.broadcast %cst_75 : f32 to vector<8x1xf32>
    %165 = arith.addf %161, %164 : vector<8x1xf32>
    %166 = math.rsqrt %165 : vector<8x1xf32>
    %167 = vector.broadcast %166 : vector<8x1xf32> to vector<8x32xf32>
    %168 = arith.mulf %163, %167 : vector<8x32xf32>
    %169 = vector.broadcast %148 : vector<1x32xf32> to vector<8x32xf32>
    %170 = arith.mulf %168, %169 : vector<8x32xf32>
    %171 = vector.broadcast %150 : vector<1x32xf32> to vector<8x32xf32>
    %172 = arith.addf %170, %171 : vector<8x32xf32>
    %173 = arith.truncf %172 : vector<8x32xf32> to vector<8x32xbf16>
    %c1 = arith.constant 1 : index
    %c0_76 = arith.constant 0 : index
    %c0_77 = arith.constant 0 : index
    %174 = vector.load %arg5[%c1, %c0_76, %c0_77] : memref<2x32x96xbf16, #tpu.memory_space<vmem>>, vector<1x32x96xbf16>
    %175 = vector.shape_cast %174 : vector<1x32x96xbf16> to vector<32x96xbf16>
    %cst_78 = arith.constant dense<0.000000e+00> : vector<8x96xf32>
    %176 = tpu.matmul %173, %175, %cst_78 {dimension_numbers = #tpu.dot_dimension_numbers<[1], [0], [0], [1], [0, 0, 1, 1], [], []>} : vector<8x32xbf16>, vector<32x96xbf16>, vector<8x96xf32> -> vector<8x96xf32>
    %c1_79 = arith.constant 1 : index
    %c0_80 = arith.constant 0 : index
    %c0_81 = arith.constant 0 : index
    %177 = vector.load %arg6[%c1_79, %c0_80, %c0_81] : memref<2x1x96xf32, #tpu.memory_space<vmem>>, vector<1x1x96xf32>
    %178 = vector.shape_cast %177 : vector<1x1x96xf32> to vector<1x96xf32>
    %179 = vector.broadcast %178 : vector<1x96xf32> to vector<8x96xf32>
    %180 = arith.addf %176, %179 : vector<8x96xf32>
    %181 = vector.extract_strided_slice %180 {offsets = [0, 0], sizes = [8, 16], strides = [1, 1]} : vector<8x96xf32> to vector<8x16xf32>
    %182 = vector.extract_strided_slice %180 {offsets = [0, 32], sizes = [8, 16], strides = [1, 1]} : vector<8x96xf32> to vector<8x16xf32>
    %183 = vector.extract_strided_slice %180 {offsets = [0, 64], sizes = [8, 16], strides = [1, 1]} : vector<8x96xf32> to vector<8x16xf32>
    %184 = arith.truncf %181 : vector<8x16xf32> to vector<8x16xbf16>
    %185 = arith.truncf %182 : vector<8x16xf32> to vector<8x16xbf16>
    %cst_82 = arith.constant dense<0.000000e+00> : vector<8x8xf32>
    %186 = tpu.matmul %184, %185, %cst_82 {dimension_numbers = #tpu.dot_dimension_numbers<[1], [1], [0], [0], [0, 0, 1, 0], [], []>} : vector<8x16xbf16>, vector<8x16xbf16>, vector<8x8xf32> -> vector<8x8xf32>
    %cst_83 = arith.constant 2.500000e-01 : f32
    %187 = vector.broadcast %cst_83 : f32 to vector<8x8xf32>
    %188 = arith.mulf %186, %187 : vector<8x8xf32>
    %189 = vector.broadcast %26 : vector<1x8xf32> to vector<8x8xf32>
    %190 = arith.addf %188, %189 : vector<8x8xf32>
    %cst_84 = arith.constant dense<0xFF800000> : vector<8xf32>
    %191 = vector.multi_reduction <maximumf>, %190, %cst_84 [1] : vector<8x8xf32> to vector<8xf32>
    %192 = vector.shape_cast %191 : vector<8xf32> to vector<8x1xf32>
    %193 = vector.broadcast %192 : vector<8x1xf32> to vector<8x8xf32>
    %194 = arith.subf %190, %193 : vector<8x8xf32>
    %195 = math.exp %194 : vector<8x8xf32>
    %cst_85 = arith.constant dense<0.000000e+00> : vector<8xf32>
    %196 = vector.multi_reduction <add>, %195, %cst_85 [1] : vector<8x8xf32> to vector<8xf32>
    %197 = vector.shape_cast %196 : vector<8xf32> to vector<8x1xf32>
    %198 = tpu.reciprocal %197 {approx = true} : vector<8x1xf32> -> vector<8x1xf32>
    %199 = vector.broadcast %198 : vector<8x1xf32> to vector<8x8xf32>
    %200 = arith.mulf %195, %199 : vector<8x8xf32>
    %201 = arith.truncf %200 : vector<8x8xf32> to vector<8x8xbf16>
    %202 = arith.truncf %183 : vector<8x16xf32> to vector<8x16xbf16>
    %cst_86 = arith.constant dense<0.000000e+00> : vector<8x16xf32>
    %203 = tpu.matmul %201, %202, %cst_86 {dimension_numbers = #tpu.dot_dimension_numbers<[1], [0], [0], [1], [0, 0, 1, 1], [], []>} : vector<8x8xbf16>, vector<8x16xbf16>, vector<8x16xf32> -> vector<8x16xf32>
    %204 = vector.extract_strided_slice %180 {offsets = [0, 16], sizes = [8, 16], strides = [1, 1]} : vector<8x96xf32> to vector<8x16xf32>
    %205 = vector.extract_strided_slice %180 {offsets = [0, 48], sizes = [8, 16], strides = [1, 1]} : vector<8x96xf32> to vector<8x16xf32>
    %206 = vector.extract_strided_slice %180 {offsets = [0, 80], sizes = [8, 16], strides = [1, 1]} : vector<8x96xf32> to vector<8x16xf32>
    %207 = arith.truncf %204 : vector<8x16xf32> to vector<8x16xbf16>
    %208 = arith.truncf %205 : vector<8x16xf32> to vector<8x16xbf16>
    %cst_87 = arith.constant dense<0.000000e+00> : vector<8x8xf32>
    %209 = tpu.matmul %207, %208, %cst_87 {dimension_numbers = #tpu.dot_dimension_numbers<[1], [1], [0], [0], [0, 0, 1, 0], [], []>} : vector<8x16xbf16>, vector<8x16xbf16>, vector<8x8xf32> -> vector<8x8xf32>
    %cst_88 = arith.constant 2.500000e-01 : f32
    %210 = vector.broadcast %cst_88 : f32 to vector<8x8xf32>
    %211 = arith.mulf %209, %210 : vector<8x8xf32>
    %212 = vector.broadcast %26 : vector<1x8xf32> to vector<8x8xf32>
    %213 = arith.addf %211, %212 : vector<8x8xf32>
    %cst_89 = arith.constant dense<0xFF800000> : vector<8xf32>
    %214 = vector.multi_reduction <maximumf>, %213, %cst_89 [1] : vector<8x8xf32> to vector<8xf32>
    %215 = vector.shape_cast %214 : vector<8xf32> to vector<8x1xf32>
    %216 = vector.broadcast %215 : vector<8x1xf32> to vector<8x8xf32>
    %217 = arith.subf %213, %216 : vector<8x8xf32>
    %218 = math.exp %217 : vector<8x8xf32>
    %cst_90 = arith.constant dense<0.000000e+00> : vector<8xf32>
    %219 = vector.multi_reduction <add>, %218, %cst_90 [1] : vector<8x8xf32> to vector<8xf32>
    %220 = vector.shape_cast %219 : vector<8xf32> to vector<8x1xf32>
    %221 = tpu.reciprocal %220 {approx = true} : vector<8x1xf32> -> vector<8x1xf32>
    %222 = vector.broadcast %221 : vector<8x1xf32> to vector<8x8xf32>
    %223 = arith.mulf %218, %222 : vector<8x8xf32>
    %224 = arith.truncf %223 : vector<8x8xf32> to vector<8x8xbf16>
    %225 = arith.truncf %206 : vector<8x16xf32> to vector<8x16xbf16>
    %cst_91 = arith.constant dense<0.000000e+00> : vector<8x16xf32>
    %226 = tpu.matmul %224, %225, %cst_91 {dimension_numbers = #tpu.dot_dimension_numbers<[1], [0], [0], [1], [0, 0, 1, 1], [], []>} : vector<8x8xbf16>, vector<8x16xbf16>, vector<8x16xf32> -> vector<8x16xf32>
    %227 = tpu.concatenate %203, %226 in 1 : vector<8x16xf32>, vector<8x16xf32> -> vector<8x32xf32>
    %228 = arith.truncf %227 : vector<8x32xf32> to vector<8x32xbf16>
    %c1_92 = arith.constant 1 : index
    %c0_93 = arith.constant 0 : index
    %c0_94 = arith.constant 0 : index
    %229 = vector.load %arg7[%c1_92, %c0_93, %c0_94] : memref<2x32x32xbf16, #tpu.memory_space<vmem>>, vector<1x32x32xbf16>
    %230 = vector.shape_cast %229 : vector<1x32x32xbf16> to vector<32x32xbf16>
    %cst_95 = arith.constant dense<0.000000e+00> : vector<8x32xf32>
    %231 = tpu.matmul %228, %230, %cst_95 {dimension_numbers = #tpu.dot_dimension_numbers<[1], [0], [0], [1], [0, 0, 1, 1], [], []>} : vector<8x32xbf16>, vector<32x32xbf16>, vector<8x32xf32> -> vector<8x32xf32>
    %c1_96 = arith.constant 1 : index
    %c0_97 = arith.constant 0 : index
    %c0_98 = arith.constant 0 : index
    %232 = vector.load %arg8[%c1_96, %c0_97, %c0_98] : memref<2x1x32xf32, #tpu.memory_space<vmem>>, vector<1x1x32xf32>
    %233 = vector.shape_cast %232 : vector<1x1x32xf32> to vector<1x32xf32>
    %234 = vector.broadcast %233 : vector<1x32xf32> to vector<8x32xf32>
    %235 = arith.addf %231, %234 : vector<8x32xf32>
    %236 = arith.addf %235, %172 : vector<8x32xf32>
    %c1_99 = arith.constant 1 : index
    %c0_100 = arith.constant 0 : index
    %c0_101 = arith.constant 0 : index
    %237 = vector.load %arg9[%c1_99, %c0_100, %c0_101] : memref<2x1x32xf32, #tpu.memory_space<vmem>>, vector<1x1x32xf32>
    %238 = vector.shape_cast %237 : vector<1x1x32xf32> to vector<1x32xf32>
    %c1_102 = arith.constant 1 : index
    %c0_103 = arith.constant 0 : index
    %c0_104 = arith.constant 0 : index
    %239 = vector.load %arg10[%c1_102, %c0_103, %c0_104] : memref<2x1x32xf32, #tpu.memory_space<vmem>>, vector<1x1x32xf32>
    %240 = vector.shape_cast %239 : vector<1x1x32xf32> to vector<1x32xf32>
    %cst_105 = arith.constant dense<0.000000e+00> : vector<8xf32>
    %241 = vector.multi_reduction <add>, %236, %cst_105 [1] : vector<8x32xf32> to vector<8xf32>
    %242 = vector.shape_cast %241 : vector<8xf32> to vector<8x1xf32>
    %cst_106 = arith.constant 3.200000e+01 : f32
    %243 = vector.broadcast %cst_106 : f32 to vector<8x1xf32>
    %244 = arith.divf %242, %243 : vector<8x1xf32>
    %245 = vector.broadcast %244 : vector<8x1xf32> to vector<8x32xf32>
    %246 = arith.subf %236, %245 : vector<8x32xf32>
    %247 = arith.mulf %246, %246 : vector<8x32xf32>
    %cst_107 = arith.constant dense<0.000000e+00> : vector<8xf32>
    %248 = vector.multi_reduction <add>, %247, %cst_107 [1] : vector<8x32xf32> to vector<8xf32>
    %249 = vector.shape_cast %248 : vector<8xf32> to vector<8x1xf32>
    %cst_108 = arith.constant 3.200000e+01 : f32
    %250 = vector.broadcast %cst_108 : f32 to vector<8x1xf32>
    %251 = arith.divf %249, %250 : vector<8x1xf32>
    %252 = vector.broadcast %244 : vector<8x1xf32> to vector<8x32xf32>
    %253 = arith.subf %236, %252 : vector<8x32xf32>
    %cst_109 = arith.constant 9.99999996E-13 : f32
    %254 = vector.broadcast %cst_109 : f32 to vector<8x1xf32>
    %255 = arith.addf %251, %254 : vector<8x1xf32>
    %256 = math.rsqrt %255 : vector<8x1xf32>
    %257 = vector.broadcast %256 : vector<8x1xf32> to vector<8x32xf32>
    %258 = arith.mulf %253, %257 : vector<8x32xf32>
    %259 = vector.broadcast %238 : vector<1x32xf32> to vector<8x32xf32>
    %260 = arith.mulf %258, %259 : vector<8x32xf32>
    %261 = vector.broadcast %240 : vector<1x32xf32> to vector<8x32xf32>
    %262 = arith.addf %260, %261 : vector<8x32xf32>
    %263 = arith.truncf %262 : vector<8x32xf32> to vector<8x32xbf16>
    %c1_110 = arith.constant 1 : index
    %c0_111 = arith.constant 0 : index
    %c0_112 = arith.constant 0 : index
    %264 = vector.load %arg11[%c1_110, %c0_111, %c0_112] : memref<2x32x64xbf16, #tpu.memory_space<vmem>>, vector<1x32x64xbf16>
    %265 = vector.shape_cast %264 : vector<1x32x64xbf16> to vector<32x64xbf16>
    %cst_113 = arith.constant dense<0.000000e+00> : vector<8x64xf32>
    %266 = tpu.matmul %263, %265, %cst_113 {dimension_numbers = #tpu.dot_dimension_numbers<[1], [0], [0], [1], [0, 0, 1, 1], [], []>} : vector<8x32xbf16>, vector<32x64xbf16>, vector<8x64xf32> -> vector<8x64xf32>
    %c1_114 = arith.constant 1 : index
    %c0_115 = arith.constant 0 : index
    %c0_116 = arith.constant 0 : index
    %267 = vector.load %arg12[%c1_114, %c0_115, %c0_116] : memref<2x1x64xf32, #tpu.memory_space<vmem>>, vector<1x1x64xf32>
    %268 = vector.shape_cast %267 : vector<1x1x64xf32> to vector<1x64xf32>
    %269 = vector.broadcast %268 : vector<1x64xf32> to vector<8x64xf32>
    %270 = arith.addf %266, %269 : vector<8x64xf32>
    %271 = arith.mulf %270, %270 : vector<8x64xf32>
    %272 = arith.mulf %270, %271 : vector<8x64xf32>
    %cst_117 = arith.constant 4.471500e-02 : f32
    %273 = vector.broadcast %cst_117 : f32 to vector<8x64xf32>
    %274 = arith.mulf %273, %272 : vector<8x64xf32>
    %275 = arith.addf %270, %274 : vector<8x64xf32>
    %cst_118 = arith.constant 0.797884583 : f32
    %276 = vector.broadcast %cst_118 : f32 to vector<8x64xf32>
    %277 = arith.mulf %276, %275 : vector<8x64xf32>
    %278 = math.tanh %277 : vector<8x64xf32>
    %cst_119 = arith.constant 1.000000e+00 : f32
    %279 = vector.broadcast %cst_119 : f32 to vector<8x64xf32>
    %280 = arith.addf %279, %278 : vector<8x64xf32>
    %cst_120 = arith.constant 5.000000e-01 : f32
    %281 = vector.broadcast %cst_120 : f32 to vector<8x64xf32>
    %282 = arith.mulf %281, %280 : vector<8x64xf32>
    %283 = arith.mulf %270, %282 : vector<8x64xf32>
    %284 = arith.truncf %283 : vector<8x64xf32> to vector<8x64xbf16>
    %c1_121 = arith.constant 1 : index
    %c0_122 = arith.constant 0 : index
    %c0_123 = arith.constant 0 : index
    %285 = vector.load %arg13[%c1_121, %c0_122, %c0_123] : memref<2x64x32xbf16, #tpu.memory_space<vmem>>, vector<1x64x32xbf16>
    %286 = vector.shape_cast %285 : vector<1x64x32xbf16> to vector<64x32xbf16>
    %cst_124 = arith.constant dense<0.000000e+00> : vector<8x32xf32>
    %287 = tpu.matmul %284, %286, %cst_124 {dimension_numbers = #tpu.dot_dimension_numbers<[1], [0], [0], [1], [0, 0, 1, 1], [], []>} : vector<8x64xbf16>, vector<64x32xbf16>, vector<8x32xf32> -> vector<8x32xf32>
    %c1_125 = arith.constant 1 : index
    %c0_126 = arith.constant 0 : index
    %c0_127 = arith.constant 0 : index
    %288 = vector.load %arg14[%c1_125, %c0_126, %c0_127] : memref<2x1x32xf32, #tpu.memory_space<vmem>>, vector<1x1x32xf32>
    %289 = vector.shape_cast %288 : vector<1x1x32xf32> to vector<1x32xf32>
    %290 = vector.broadcast %289 : vector<1x32xf32> to vector<8x32xf32>
    %291 = arith.addf %287, %290 : vector<8x32xf32>
    %292 = arith.addf %291, %262 : vector<8x32xf32>
    %c1_128 = arith.constant 1 : index
    %c0_129 = arith.constant 0 : index
    %c0_130 = arith.constant 0 : index
    %293 = vector.load %arg15[%c1_128, %c0_129, %c0_130] : memref<2x1x32xf32, #tpu.memory_space<vmem>>, vector<1x1x32xf32>
    %294 = vector.shape_cast %293 : vector<1x1x32xf32> to vector<1x32xf32>
    %c1_131 = arith.constant 1 : index
    %c0_132 = arith.constant 0 : index
    %c0_133 = arith.constant 0 : index
    %295 = vector.load %arg16[%c1_131, %c0_132, %c0_133] : memref<2x1x32xf32, #tpu.memory_space<vmem>>, vector<1x1x32xf32>
    %296 = vector.shape_cast %295 : vector<1x1x32xf32> to vector<1x32xf32>
    %cst_134 = arith.constant dense<0.000000e+00> : vector<8xf32>
    %297 = vector.multi_reduction <add>, %292, %cst_134 [1] : vector<8x32xf32> to vector<8xf32>
    %298 = vector.shape_cast %297 : vector<8xf32> to vector<8x1xf32>
    %cst_135 = arith.constant 3.200000e+01 : f32
    %299 = vector.broadcast %cst_135 : f32 to vector<8x1xf32>
    %300 = arith.divf %298, %299 : vector<8x1xf32>
    %301 = vector.broadcast %300 : vector<8x1xf32> to vector<8x32xf32>
    %302 = arith.subf %292, %301 : vector<8x32xf32>
    %303 = arith.mulf %302, %302 : vector<8x32xf32>
    %cst_136 = arith.constant dense<0.000000e+00> : vector<8xf32>
    %304 = vector.multi_reduction <add>, %303, %cst_136 [1] : vector<8x32xf32> to vector<8xf32>
    %305 = vector.shape_cast %304 : vector<8xf32> to vector<8x1xf32>
    %cst_137 = arith.constant 3.200000e+01 : f32
    %306 = vector.broadcast %cst_137 : f32 to vector<8x1xf32>
    %307 = arith.divf %305, %306 : vector<8x1xf32>
    %308 = vector.broadcast %300 : vector<8x1xf32> to vector<8x32xf32>
    %309 = arith.subf %292, %308 : vector<8x32xf32>
    %cst_138 = arith.constant 9.99999996E-13 : f32
    %310 = vector.broadcast %cst_138 : f32 to vector<8x1xf32>
    %311 = arith.addf %307, %310 : vector<8x1xf32>
    %312 = math.rsqrt %311 : vector<8x1xf32>
    %313 = vector.broadcast %312 : vector<8x1xf32> to vector<8x32xf32>
    %314 = arith.mulf %309, %313 : vector<8x32xf32>
    %315 = vector.broadcast %294 : vector<1x32xf32> to vector<8x32xf32>
    %316 = arith.mulf %314, %315 : vector<8x32xf32>
    %317 = vector.broadcast %296 : vector<1x32xf32> to vector<8x32xf32>
    %318 = arith.addf %316, %317 : vector<8x32xf32>
    %319 = arith.truncf %318 : vector<8x32xf32> to vector<8x32xbf16>
    %c0_139 = arith.constant 0 : index
    %c0_140 = arith.constant 0 : index
    %320 = vector.load %arg17[%c0_139, %c0_140] : memref<32x32xbf16, #tpu.memory_space<vmem>>, vector<32x32xbf16>
    %cst_141 = arith.constant dense<0.000000e+00> : vector<8x32xf32>
    %321 = tpu.matmul %319, %320, %cst_141 {dimension_numbers = #tpu.dot_dimension_numbers<[1], [0], [0], [1], [0, 0, 1, 1], [], []>} : vector<8x32xbf16>, vector<32x32xbf16>, vector<8x32xf32> -> vector<8x32xf32>
    %c0_142 = arith.constant 0 : index
    %c0_143 = arith.constant 0 : index
    %322 = vector.load %arg18[%c0_142, %c0_143] : memref<1x32xf32, #tpu.memory_space<vmem>>, vector<1x32xf32>
    %323 = vector.broadcast %322 : vector<1x32xf32> to vector<8x32xf32>
    %324 = arith.addf %321, %323 : vector<8x32xf32>
    %325 = math.tanh %324 : vector<8x32xf32>
    %326 = arith.truncf %325 : vector<8x32xf32> to vector<8x32xbf16>
    %c0_144 = arith.constant 0 : index
    %c0_145 = arith.constant 0 : index
    %327 = vector.load %arg19[%c0_144, %c0_145] : memref<32x128xbf16, #tpu.memory_space<vmem>>, vector<32x128xbf16>
    %cst_146 = arith.constant dense<0.000000e+00> : vector<8x128xf32>
    %328 = tpu.matmul %326, %327, %cst_146 {dimension_numbers = #tpu.dot_dimension_numbers<[1], [0], [0], [1], [0, 0, 1, 1], [], []>} : vector<8x32xbf16>, vector<32x128xbf16>, vector<8x128xf32> -> vector<8x128xf32>
    %c0_147 = arith.constant 0 : index
    %c0_148 = arith.constant 0 : index
    %329 = vector.load %arg20[%c0_147, %c0_148] : memref<1x128xf32, #tpu.memory_space<vmem>>, vector<1x128xf32>
    %330 = vector.broadcast %329 : vector<1x128xf32> to vector<8x128xf32>
    %331 = arith.addf %328, %330 : vector<8x128xf32>
    %332 = vector.extract_strided_slice %331 {offsets = [0, 0], sizes = [1, 128], strides = [1, 1]} : vector<8x128xf32> to vector<1x128xf32>
    %c0_149 = arith.constant 0 : index
    %c0_150 = arith.constant 0 : index
    %c0_151 = arith.constant 0 : index
    %333 = vector.load %arg21[%c0_149, %c0_150, %c0_151] : memref<1x1x128xf32, #tpu.memory_space<vmem>>, vector<1x1x128xf32>
    %334 = vector.shape_cast %333 : vector<1x1x128xf32> to vector<1x128xf32>
    %335 = vector.shape_cast %332 : vector<1x128xf32> to vector<1x1x128xf32>
    tpu.vector_store %arg21[%c0_149, %c0_150, %c0_151], %335 {strides = array<i32>} : memref<1x1x128xf32, #tpu.memory_space<vmem>>, vector<1x1x128xf32>,
    return
  }
  func.func @transform_0(%arg0: i32) -> (i32, i32) {
    %c0_i32 = arith.constant 0 : i32
    %c0_i32_0 = arith.constant 0 : i32
    return %arg0, %c0_i32 : i32, i32
  }
  func.func @transform_1(%arg0: i32) -> (i32, i32, i32) {
    %c0_i32 = arith.constant 0 : i32
    %c0_i32_0 = arith.constant 0 : i32
    %c0_i32_1 = arith.constant 0 : i32
    return %arg0, %c0_i32, %c0_i32_0 : i32, i32, i32
  }
  func.func @transform_2(%arg0: i32) -> (i32, i32) {
    %c0_i32 = arith.constant 0 : i32
    %c0_i32_0 = arith.constant 0 : i32
    %c0_i32_1 = arith.constant 0 : i32
    return %c0_i32, %c0_i32_0 : i32, i32
  }
  func.func @transform_3(%arg0: i32) -> (i32, i32) {
    %c0_i32 = arith.constant 0 : i32
    %c0_i32_0 = arith.constant 0 : i32
    %c0_i32_1 = arith.constant 0 : i32
    return %c0_i32, %c0_i32_0 : i32, i32
  }
  func.func @transform_4(%arg0: i32) -> (i32, i32, i32) {
    %c0_i32 = arith.constant 0 : i32
    %c0_i32_0 = arith.constant 0 : i32
    %c0_i32_1 = arith.constant 0 : i32
    %c0_i32_2 = arith.constant 0 : i32
    return %c0_i32, %c0_i32_0, %c0_i32_1 : i32, i32, i32
  }
  func.func @transform_5(%arg0: i32) -> (i32, i32, i32) {
    %c0_i32 = arith.constant 0 : i32
    %c0_i32_0 = arith.constant 0 : i32
    %c0_i32_1 = arith.constant 0 : i32
    %c0_i32_2 = arith.constant 0 : i32
    return %c0_i32, %c0_i32_0, %c0_i32_1 : i32, i32, i32
  }
  func.func @transform_6(%arg0: i32) -> (i32, i32, i32) {
    %c0_i32 = arith.constant 0 : i32
    %c0_i32_0 = arith.constant 0 : i32
    %c0_i32_1 = arith.constant 0 : i32
    %c0_i32_2 = arith.constant 0 : i32
    return %c0_i32, %c0_i32_0, %c0_i32_1 : i32, i32, i32
  }
  func.func @transform_7(%arg0: i32) -> (i32, i32, i32) {
    %c0_i32 = arith.constant 0 : i32
    %c0_i32_0 = arith.constant 0 : i32
    %c0_i32_1 = arith.constant 0 : i32
    %c0_i32_2 = arith.constant 0 : i32
    return %c0_i32, %c0_i32_0, %c0_i32_1 : i32, i32, i32
  }
  func.func @transform_8(%arg0: i32) -> (i32, i32, i32) {
    %c0_i32 = arith.constant 0 : i32
    %c0_i32_0 = arith.constant 0 : i32
    %c0_i32_1 = arith.constant 0 : i32
    %c0_i32_2 = arith.constant 0 : i32
    return %c0_i32, %c0_i32_0, %c0_i32_1 : i32, i32, i32
  }
  func.func @transform_9(%arg0: i32) -> (i32, i32, i32) {
    %c0_i32 = arith.constant 0 : i32
    %c0_i32_0 = arith.constant 0 : i32
    %c0_i32_1 = arith.constant 0 : i32
    %c0_i32_2 = arith.constant 0 : i32
    return %c0_i32, %c0_i32_0, %c0_i32_1 : i32, i32, i32
  }
  func.func @transform_10(%arg0: i32) -> (i32, i32, i32) {
    %c0_i32 = arith.constant 0 : i32
    %c0_i32_0 = arith.constant 0 : i32
    %c0_i32_1 = arith.constant 0 : i32
    %c0_i32_2 = arith.constant 0 : i32
    return %c0_i32, %c0_i32_0, %c0_i32_1 : i32, i32, i32
  }
  func.func @transform_11(%arg0: i32) -> (i32, i32, i32) {
    %c0_i32 = arith.constant 0 : i32
    %c0_i32_0 = arith.constant 0 : i32
    %c0_i32_1 = arith.constant 0 : i32
    %c0_i32_2 = arith.constant 0 : i32
    return %c0_i32, %c0_i32_0, %c0_i32_1 : i32, i32, i32
  }
  func.func @transform_12(%arg0: i32) -> (i32, i32, i32) {
    %c0_i32 = arith.constant 0 : i32
    %c0_i32_0 = arith.constant 0 : i32
    %c0_i32_1 = arith.constant 0 : i32
    %c0_i32_2 = arith.constant 0 : i32
    return %c0_i32, %c0_i32_0, %c0_i32_1 : i32, i32, i32
  }
  func.func @transform_13(%arg0: i32) -> (i32, i32, i32) {
    %c0_i32 = arith.constant 0 : i32
    %c0_i32_0 = arith.constant 0 : i32
    %c0_i32_1 = arith.constant 0 : i32
    %c0_i32_2 = arith.constant 0 : i32
    return %c0_i32, %c0_i32_0, %c0_i32_1 : i32, i32, i32
  }
  func.func @transform_14(%arg0: i32) -> (i32, i32, i32) {
    %c0_i32 = arith.constant 0 : i32
    %c0_i32_0 = arith.constant 0 : i32
    %c0_i32_1 = arith.constant 0 : i32
    %c0_i32_2 = arith.constant 0 : i32
    return %c0_i32, %c0_i32_0, %c0_i32_1 : i32, i32, i32
  }
  func.func @transform_15(%arg0: i32) -> (i32, i32, i32) {
    %c0_i32 = arith.constant 0 : i32
    %c0_i32_0 = arith.constant 0 : i32
    %c0_i32_1 = arith.constant 0 : i32
    %c0_i32_2 = arith.constant 0 : i32
    return %c0_i32, %c0_i32_0, %c0_i32_1 : i32, i32, i32
  }
  func.func @transform_16(%arg0: i32) -> (i32, i32) {
    %c0_i32 = arith.constant 0 : i32
    %c0_i32_0 = arith.constant 0 : i32
    %c0_i32_1 = arith.constant 0 : i32
    return %c0_i32, %c0_i32_0 : i32, i32
  }
  func.func @transform_17(%arg0: i32) -> (i32, i32) {
    %c0_i32 = arith.constant 0 : i32
    %c0_i32_0 = arith.constant 0 : i32
    %c0_i32_1 = arith.constant 0 : i32
    return %c0_i32, %c0_i32_0 : i32, i32
  }
  func.func @transform_18(%arg0: i32) -> (i32, i32) {
    %c0_i32 = arith.constant 0 : i32
    %c0_i32_0 = arith.constant 0 : i32
    %c0_i32_1 = arith.constant 0 : i32
    return %c0_i32, %c0_i32_0 : i32, i32
  }
  func.func @transform_19(%arg0: i32) -> (i32, i32) {
    %c0_i32 = arith.constant 0 : i32
    %c0_i32_0 = arith.constant 0 : i32
    %c0_i32_1 = arith.constant 0 : i32
    return %c0_i32, %c0_i32_0 : i32, i32
  }
  func.func @transform_20(%arg0: i32) -> (i32, i32, i32) {
    %c0_i32 = arith.constant 0 : i32
    %c0_i32_0 = arith.constant 0 : i32
    %c0_i32_1 = arith.constant 0 : i32
    return %arg0, %c0_i32, %c0_i32_0 : i32, i32, i32
  }
}

</mosaic_0001>

<bundles_post_ra>
// kernel: victim_forward.1
= control target key start
LH: loop header
LB: loop body
LE: loop exit
PB: predicated region body
PF: predicated region fallthrough
CT: control target
= control target key end

     0   :  { %s3018_s0 = inlined_call_operand.vmem [shape: f32[16,32], index: 0, kind: input, shape index: {}]   ;;  %s3019_s1 = inlined_call_operand.vmem [shape: f32[2,1,8], index: 1, kind: input, shape index: {}]   ;;  %s3020_s2 = inlined_call_operand.vmem [shape: f32[1,32], index: 2, kind: input, shape index: {}]   ;;  %s3021_s3 = inlined_call_operand.vmem [shape: f32[1,32], index: 3, kind: input, shape index: {}]   ;;  %s3022_s4 = inlined_call_operand.vmem [shape: bf16[2,32,96], index: 4, kind: input, shape index: {}]   ;;  %s3023_s5 = inlined_call_operand.vmem [shape: f32[2,1,96], index: 5, kind: input, shape index: {}]   ;;  %s3024_s6 = inlined_call_operand.vmem [shape: bf16[2,32,32], index: 6, kind: input, shape index: {}]   ;;  %s3025_s7 = inlined_call_operand.vmem [shape: f32[2,1,32], index: 7, kind: input, shape index: {}]   ;;  %s3026_s8 = inlined_call_operand.vmem [shape: f32[2,1,32], index: 8, kind: input, shape index: {}]   ;;  %s3027_s9 = inlined_call_operand.vmem [shape: f32[2,1,32], index: 9, kind: input, shape index: {}]   ;;  %s3028_s10 = inlined_call_operand.vmem [shape: bf16[2,32,64], index: 10, kind: input, shape index: {}]   ;;  %s3029_s11 = inlined_call_operand.vmem [shape: f32[2,1,64], index: 11, kind: input, shape index: {}]   ;;  %s3030_s12 = inlined_call_operand.vmem [shape: bf16[2,64,32], index: 12, kind: input, shape index: {}]   ;;  %s3031_s13 = inlined_call_operand.vmem [shape: f32[2,1,32], index: 13, kind: input, shape index: {}]   ;;  %s3032_s14 = inlined_call_operand.vmem [shape: f32[2,1,32], index: 14, kind: input, shape index: {}]   ;;  %s3033_s15 = inlined_call_operand.vmem [shape: f32[2,1,32], index: 15, kind: input, shape index: {}]   ;;  %s3034_s16 = inlined_call_operand.vmem [shape: bf16[32,32], index: 16, kind: input, shape index: {}]   ;;  %s3035_s17 = inlined_call_operand.vmem [shape: f32[1,32], index: 17, kind: input, shape index: {}]   ;;  %s3036_s18 = inlined_call_operand.vmem [shape: bf16[32,128], index: 18, kind: input, shape index: {}]   ;;  %s3037_s19 = inlined_call_operand.vmem [shape: f32[1,128], index: 19, kind: input, shape index: {}]   ;;  %s3038_s20 = inlined_call_operand.hbm [shape: f32[2,1,128], index: 20, kind: output, shape index: {}]  }
   0x1   :  { %3049 = sst [smem:[#allocation9_spill]] %s3018_s0 }
   0x2   :  { %3050 = sst [smem:[#allocation10_spill]] %s3019_s1 }
   0x3   :  { %3051 = sst [smem:[#allocation11_spill]] %s3020_s2 }
   0x4   :  { %3052 = sst [smem:[#allocation12_spill]] %s3021_s3 }
   0x5   :  { %3053 = sst [smem:[#allocation13_spill]] %s3022_s4 }
   0x6   :  { %25 = vsyncpa [#allocation3], 0 }
   0x7   :  { %27 = vsyncpa [#allocation3 + $0x1], 0  ;;  %s2637_s1 = smov 0   ;;  %s2639_s22 = smov 0  }
   0x8   :  { %s2641_s23 = smov 0   ;;  %s2643_s24 = smov 0  }
   0x9 LB: > { %3054 = sst [smem:[#allocation5_spill]] %s2517_s23  ;;  %s2658_s2 = sadd.s32 4294967295, %s2521_s24   ;;  %s2521_s24 = sphi %s2643_s24, %s3070_s24   ;;  %s2517_s23 = sphi %s2641_s23, %s3072_s23   ;;  %s2513_s22 = sphi %s2639_s22, %s3074_s22   ;;  %s2509_s1 = sphi %s2637_s1, %s3073_s1  }
   0xa   : > { %s2071_s25 = sadd.s32 4294967294, %s2521_s24   ;;  %s2662_s3 = sadd.s32 1, %s2521_s24  }
   0xb   : > { %3055 = sst [smem:[#allocation6_spill]] %s2662_s3  ;;  %s470_s26 = sadd.s32 1, %s2517_s23 }
   0xc   : > { %s467_s27 = ssub.s32 %s2521_s24, %s2662_s3  ;;  %p480_p0 = scmp.ne.s32.totalorder %s2517_s23, %s2513_s22 }
   0xd   : > { %p468_p1 = scmp.eq.s32.totalorder %s467_s27, 0  ;;  %p481_p2 = scmp.eq.s32.totalorder %s2658_s2, 1 }
   0xe   : > { %p486_p3 = scmp.ne.s32.totalorder %s2513_s22, %s2509_s1  ;;  %p487_p4 = scmp.eq.s32.totalorder %s2071_s25, 1 }
   0xf   : > { %s2673_s28 = scalar_select %p468_p1, %s2517_s23, %s470_s26  }
  0x10   : > { %p2675_p5 = por %p481_p2, %p480_p0  ;;  %p2679_p6 = por %p487_p4, %p486_p3 }
  0x11   : > { %3056 = sst [smem:[#allocation7_spill]] %s2673_s28  ;;  %p2074_p7 = scmp.ge.s32.totalorder %s2521_s24, 1 }
  0x12   : > { %s3058_s29 = scalar_select %p2679_p6, 1, 0 }
  0x13   : > { %p572_p8 = scmp.lt.s32.totalorder %s2521_s24, 3 }
  0x14   : > { %3059 = sst [smem:[#allocation8_spill]] %s3058_s29 }
  0x15   : > { %p573_p9 = pnand %p2074_p7, %p572_p8 }
  0x16   : > { %p631_p10 = scmp.lt.s32.totalorder (!%p573_p9), %s2658_s2, 1  ;;  %vm642_vm0 = vcmask (!%p573_p9), 261120   ;;  %s3060_s26 = sld [smem:[#allocation9_spill]] (!%p573_p9)  ;;  %v2523_v8 = vmov (!%p573_p9), 0.0   ;;  %vm2524_vm1 = vmmov (!%p573_p9), 0   ;;  %vm743_vm2 = vcmask (!%p573_p9), 130048  }
  0x17   : > { %576 = sbr.rel (%p573_p9) target bundleno = 5834 (0x16ca), region = 100  ;;  %s3061_s3 = sld [smem:[#allocation13_spill]] (!%p573_p9)  ;;  %2220 = vmatprep.subr.bf16.mxu0 (!%p573_p9), %v2523_v8  ;;  %2228 = vmatprep.subr.bf16.mxu1 (!%p573_p9), %v2523_v8  ;;  %v2078_v20 = vld [vmem:[%s3023_s5] ss:$0 sm:$0xff] (!%p573_p9)  ;;  %vm798_vm3 = vcmask (!%p573_p9), 64512   ;;  %vm816_vm4 = vcmask (!%p573_p9), 1043456  }
  0x18   : > { %2224 = vmatprep.mubr.msk.bf16.mxu0 (!%p573_p9), %vm2524_vm1, %v2523_v8  ;;  %2230 = vmatprep.mubr.msk.bf16.mxu1 (!%p573_p9), %vm2524_vm1, %v2523_v8  ;;  %s3062_s25 = sld [smem:[#allocation11_spill]] (!%p573_p9)  ;;  %s3047_s23 = smov (!%p573_p9), 112   ;;  %vm1190_vm5 = vcmask (!%p573_p9), 523264  }
  0x19   : > { %s2526_s28 = smov (!%p573_p9), 96   ;;  %s3046_s21 = smov (!%p573_p9), 64  }
  0x1a   : > { %s629_s29 = sand.u32 (!%p573_p9), 1, %s2513_s22  }
  0x1d   : > { %v2403_v7 = vld [vmem:[%s3061_s3] sm:$0xff] (!%p573_p9)   ;;  %v2404_v9 = vld [vmem:[%s3061_s3 + $0x8] sm:$0xff] (!%p573_p9)  }
  0x1e   : > { %s2687_s30 = scalar_select %p631_p10, %s2658_s2, 1  ;;  %2221 = vmatpush3.bf16.msra.mxu0 %v2403_v7  ;;  %v2076_v14 = vld [vmem:[%s3062_s25] ss:$0 sm:$0xff] }
  0x1f   : > { %2222 = vmatprep.subr.bf16.mxu0 %v2523_v8  ;;  %s2527_s25 = smov 80  }
  0x20   : > { %s2075_s0 = sshll.u32 %s2687_s30, 3 }
  0x21   : > { %s634_s27 = scalar_lea.vmem %s3060_s26, %s2075_s0  ;;  %s3063_s0 = sld [smem:[#allocation12_spill]] }
  0x22   : > { %v639_v0 = vld [vmem:[%s634_s27] sm:$0xff]  ;;  %2223 = vmatpush3.bf16.msra.mxu0 %v2404_v9  ;;  %s3064_s27 = sld [smem:[#allocation10_spill]]  ;;  %s3065_s26 = smov 112  }
  0x23   : > { %v643_v1 = vsel %vm642_vm0, %v639_v0, 0.0  ;;  %2234 = vmatprep.subr.bf16.mxu0 %v2523_v8 }
  0x24   : > { %644 = vadd.xlane.f32.xlu0 %v643_v1 }
  0x27   : > { %v2077_v16 = vld [vmem:[%s3063_s0] ss:$0 sm:$0xff] }
  0x28   : > { %s637_s0 = scalar_lea.vmem %s3064_s27, %s2687_s30  ;;  %s3044_s30 = smov 48  }
  0x29   : > { %v2742_v32 = vld [vmem:[%s637_s0] ss:$0 sm:$0xff]  ;;  %s3068_s0 = smov 16  }
  0xb1   : > { %v645_v2 = vpop.xlane.xlu0 %644 }
  0xb2   : > { %v647_v3 = vmul.f32 0.03125, %v645_v2 }
  0xb4   : > { %v648_v4 = vsub.f32 %v639_v0, %v647_v3 }
  0xb6   : > { %v649_v5 = vmul.f32 %v648_v4, %v648_v4 }
  0xb8   : > { %v650_v6 = vsel %vm642_vm0, %v649_v5, 0.0  ;;  %v2405_v5 = vld [vmem:[%s3024_s6] sm:$0xff]  }
  0xb9   : > { %651 = vadd.xlane.f32.xlu0 %v650_v6  ;;  %v2406_v6 = vld [vmem:[%s3024_s6 + $0x8] sm:$0xff]  }
 0x146   : > { %v652_v10 = vpop.xlane.xlu0 %651 }
 0x147   : > { %v653_v11 = vmul.f32 0.03125, %v652_v10 }
 0x149   : > { %v654_v12 = vadd.f32 1e-12, %v653_v11 }
 0x14b   : > { %2427 = vrsqrt.f32 %v654_v12 }
 0x155   : > { %v2428_v13 = vpop.eup %2427 }
 0x156   : > { %v656_v15 = vmul.f32 %v2428_v13, %v648_v4 }
 0x158   : > { %v663_v17 = vmul.f32 %v2076_v14, %v656_v15 }
 0x15a   : > { %v2715_v18 = vadd.f32 %v2077_v16, %v663_v17 }
 0x15c   : > { %v672_v19 = vpack.c.bf16 %v2715_v18, %v2715_v18 }
 0x15e   : > { %2225 = vmatmul.mubr.msk.bf16.vlgmr.msra.gmra.mrb[0].mxu0 %vm642_vm0, %v672_v19 }
 0x15f   : > { %2236 = vmatprep.mubr.msk.bf16.mxu0 %vm2524_vm1, %v2523_v8 }
 0x231   : > { %v733_v21 = vpop.f32.mrb[0].mxu0 }
 0x232   : > { %v734_v22 = vadd.f32 %v2078_v20, %v733_v21  ;;  %v2226_v23 = vpop.f32.mrb[1].mxu0  ;;  %v2087_v20 = vld [vmem:[%s3025_s7] ss:$0 sm:$0xff] }
 0x233   : > { %v736_v24 = vpop.f32.mrb[2].mxu0 }
 0x234   : > { %v739_v25 = vpack.c.bf16 %v734_v22, %v734_v22  ;;  %v2227_v26 = vpop.f32.mrb[3].mxu0 }
 0x236   : > { %860 = vrot.lane.b32.xlu0 %v739_v25, %s3047_s23  ;;  %741 = vrot.lane.b32.xlu1 %v739_v25, %s2526_s28 }
 0x23a   : > { %862 = vrot.lane.b32.xlu1 %v739_v25, %s2527_s25 }
 0x2a8   : > { %v742_v27 = vpop.permute.xlu1 %741  ;;  %v861_v31 = vpop.permute.xlu0 %860 }
 0x2a9   : > { %v748_v28 = vsel %vm743_vm2, %v742_v27, 0 }
 0x2aa   : > { %2229 = vmatpush3.bf16.xpose.msra.mxu1 %v748_v28 }
 0x2ab   : > { %2240 = vmatprep.subr.bf16.mxu1 %v2523_v8 }
 0x2ac   : > { %v863_v29 = vpop.permute.xlu1 %862 }
 0x2ad   : > { %v868_v30 = vsel %vm743_vm2, %v863_v29, 0 }
 0x2b1   : > { %2231 = vmatmul.mubr.msk.bf16.vlgmr.msra.gmra.mrb[0].mxu1 %vm743_vm2, %v739_v25 }
 0x2b2   : > { %2241 = vmatpush3.bf16.xpose.msra.mxu1 %v868_v30  ;;  %2242 = vmatprep.mubr.msk.bf16.mxu1 %vm2524_vm1, %v2523_v8 }
 0x2b3   : > { %2252 = vmatprep.subr.bf16.mxu1 %v2523_v8 }
 0x2b9   : > { %2243 = vmatmul.mubr.msk.bf16.vlgmr.msra.gmra.mrb[4].mxu1 %vm743_vm2, %v861_v31 }
 0x2ba   : > { %2256 = vmatprep.mubr.msk.bf16.mxu1 %vm2524_vm1, %v2523_v8  ;;  %2253 = vmatpush3.bf16.msra.mxu1 %v2405_v5 }
 0x2bb   : > { %2254 = vmatprep.subr.bf16.mxu1 %v2523_v8 }
 0x2be   : > { %2255 = vmatpush3.bf16.msra.mxu1 %v2406_v6 }
 0x2bf   : > { %2268 = vmatprep.subr.bf16.mxu1 %v2523_v8 }
 0x384   : > { %v784_v33 = vpop.f32.mrb[0].mxu1 }
 0x385   : > { %v790_v34 = vmul.f32 0.25, %v784_v33  ;;  %v2232_v35 = vpop.f32.mrb[1].mxu1 }
 0x386   : > { %v787_v36 = vpop.f32.mrb[2].mxu1 }
 0x387   : > { %v2233_v37 = vpop.f32.mrb[3].mxu1  ;;  %v797_v38 = vadd.f32 %v2742_v32, %v790_v34  ;;  %v2407_v34 = vld [vmem:[%s3028_s10] sm:$0xff]  }
 0x389   : > { %v799_v39 = vsel %vm798_vm3, %v797_v38, -inf }
 0x38a   : > { %800 = vmax.xlane.f32.xlu1 %v799_v39  ;;  %v2091_v39 = vld [vmem:[%s3026_s8] ss:$0 sm:$0xff] }
 0x38c   : > { %v904_v40 = vpop.f32.mrb[4].mxu1 }
 0x38d   : > { %v910_v41 = vmul.f32 0.25, %v904_v40  ;;  %v2244_v42 = vpop.f32.mrb[5].mxu1 }
 0x38e   : > { %v907_v43 = vpop.f32.mrb[6].mxu1 }
 0x38f   : > { %v2245_v44 = vpop.f32.mrb[7].mxu1  ;;  %v911_v45 = vadd.f32 %v2742_v32, %v910_v41  ;;  %v2092_v41 = vld [vmem:[%s3027_s9] ss:$0 sm:$0xff] }
 0x391   : > { %v912_v46 = vsel %vm798_vm3, %v911_v45, -inf }
 0x392   : > { %913 = vmax.xlane.f32.xlu0 %v912_v46  ;;  %v2410_v46 = vld [vmem:[%s3030_s12 + $0x8] sm:$0xff]  }
 0x3a8   : > { %924 = vrot.lane.b32.xlu0 %v739_v25, %s3044_s30  ;;  %s3045_s30 = smov 16  }
 0x417   : > { %v801_v47 = vpop.xlane.xlu1 %800 }
 0x418   : > { %v802_v48 = vsub.f32 %v797_v38, %v801_v47  ;;  %v2411_v47 = vld [vmem:[%s3030_s12 + $0x10] sm:$0xff]  }
 0x41a   : > { %v803_v49 = vmul.f32 1.442695, %v802_v48  ;;  %v2412_v48 = vld [vmem:[%s3030_s12 + $0x18] sm:$0xff]  }
 0x41c   : > { %2429 = vpow2.f32 %v803_v49  ;;  %v2093_v49 = vld [vmem:[%s3029_s11] ss:$0 sm:$0xff] }
 0x41f   : > { %v914_v50 = vpop.xlane.xlu0 %913 }
 0x420   : > { %v915_v51 = vsub.f32 %v911_v45, %v914_v50  ;;  %v2409_v45 = vld [vmem:[%s3030_s12] sm:$0xff]  }
 0x422   : > { %v916_v52 = vmul.f32 1.442695, %v915_v51 }
 0x423   : > { %v925_v63 = vpop.permute.xlu0 %924 }
 0x424   : > { %2431 = vpow2.f32 %v916_v52  ;;  %v930_v1 = vsel %vm816_vm4, %v925_v63, 0 }
 0x426   : > { %v2430_v53 = vpop.eup %2429 }
 0x427   : > { %v805_v54 = vsel %vm798_vm3, %v2430_v53, 0.0 }
 0x428   : > { %806 = vadd.xlane.f32.xlu1 %v805_v54 }
 0x42e   : > { %v2432_v55 = vpop.eup %2431 }
 0x42f   : > { %v918_v56 = vsel %vm798_vm3, %v2432_v55, 0.0 }
 0x430   : > { %919 = vadd.xlane.f32.xlu1 %v918_v56 }
 0x441   : > { %811 = vrot.lane.b32.xlu1 %v739_v25, %s3046_s21 }
 0x4b5   : > { %v807_v57 = vpop.xlane.xlu1 %806 }
 0x4b6   : > { %2433 = vrcp.f32 %v807_v57 }
 0x4bd   : > { %v920_v58 = vpop.xlane.xlu1 %919 }
 0x4be   : > { %2435 = vrcp.f32 %v920_v58 }
 0x4c0   : > { %v2434_v59 = vpop.eup %2433 }
 0x4c1   : > { %v809_v60 = vmul.f32 %v2434_v59, %v2430_v53  ;;  %v812_v61 = vpop.permute.xlu1 %811 }
 0x4c2   : > { %v818_v62 = vsel %vm816_vm4, %v812_v61, 0 }
 0x4c3   : > { %2235 = vmatpush3.bf16.msra.mxu0 %v818_v62  ;;  %v810_v0 = vpack.c.bf16 %v809_v60, %v809_v60 }
 0x4c4   : > { %2246 = vmatprep.subr.bf16.mxu0 %v2523_v8 }
 0x4c6   : > { %2237 = vmatmul.mubr.msk.bf16.vlgmr.msra.gmra.mrb[4].mxu0 %vm798_vm3, %v810_v0 }
 0x4c7   : > { %2247 = vmatpush3.bf16.msra.mxu0 %v930_v1  ;;  %2248 = vmatprep.mubr.msk.bf16.mxu0 %vm2524_vm1, %v2523_v8  ;;  %v2097_v1 = vld [vmem:[%s3031_s13] ss:$0 sm:$0xff] }
 0x4c8   : > { %v2436_v2 = vpop.eup %2435  ;;  %2260 = vmatprep.subr.bf16.mxu0 %v2523_v8 }
 0x4c9   : > { %v922_v3 = vmul.f32 %v2436_v2, %v2432_v55 }
 0x4cb   : > { %v923_v4 = vpack.c.bf16 %v922_v3, %v922_v3 }
 0x4ce   : > { %2249 = vmatmul.mubr.msk.bf16.vlgmr.msra.gmra.mrb[8].mxu0 %vm798_vm3, %v923_v4 }
 0x4cf   : > { %2264 = vmatprep.mubr.msk.bf16.mxu0 %vm2524_vm1, %v2523_v8  ;;  %2261 = vmatpush3.bf16.msra.mxu0 %v2407_v34 }
 0x4d0   : > { %2262 = vmatprep.subr.bf16.mxu0 %v2523_v8 }
 0x599   : > { %v854_v7 = vpop.f32.mrb[4].mxu0 }
 0x59a   : > { %v2238_v9 = vpop.f32.mrb[5].mxu0 }
 0x59b   : > { %v857_v10 = vpop.f32.mrb[6].mxu0 }
 0x59c   : > { %v2239_v11 = vpop.f32.mrb[7].mxu0 }
 0x5a1   : > { %v966_v12 = vpop.f32.mrb[8].mxu0 }
 0x5a2   : > { %973 = vrot.lane.b32.xlu1 %v966_v12, %s3045_s30  ;;  %v2250_v13 = vpop.f32.mrb[9].mxu0  ;;  %s630_s30 = scalar_lea.vmem [#allocation2], %s629_s29 }
 0x5a3   : > { %v969_v14 = vpop.f32.mrb[10].mxu0  ;;  %s2007_s23 = sshll.u32 %s630_s30, 4  ;;  %s2978_s23 = int_to_ptr.vmem [resolvable:$true] %s2007_s23 }
 0x5a4   : > { %v2251_v15 = vpop.f32.mrb[11].mxu0 }
 0x5a5   : > { %v2413_v15 = vld [vmem:[%s3061_s3 + $0x10] sm:$0xff]  }
 0x614   : > { %v974_v16 = vpop.permute.xlu1 %973 }
 0x615   : > { %v976_v17 = vsel %vm743_vm2, %v854_v7, %v974_v16  ;;  %v2414_v16 = vld [vmem:[%s3061_s3 + $0x18] sm:$0xff]  }
 0x616   : > { %v977_v19 = vpack.c.bf16 %v976_v17, %v976_v17 }
 0x618   : > { %2257 = vmatmul.mubr.msk.bf16.vlgmr.msra.gmra.mrb[8].mxu1 %vm642_vm0, %v977_v19 }
 0x619   : > { %2276 = vmatprep.mubr.msk.bf16.mxu1 %vm2524_vm1, %v2523_v8  ;;  %2269 = vmatpush3.bf16.msra.mxu1 %v2409_v45 }
 0x61a   : > { %2270 = vmatprep.subr.bf16.mxu1 %v2523_v8 }
 0x61d   : > { %2271 = vmatpush3.bf16.msra.mxu1 %v2410_v46 }
 0x61e   : > { %2272 = vmatprep.subr.bf16.mxu1 %v2523_v8 }
 0x621   : > { %2273 = vmatpush3.bf16.msra.mxu1 %v2411_v47 }
 0x622   : > { %2274 = vmatprep.subr.bf16.mxu1 %v2523_v8 }
 0x625   : > { %2275 = vmatpush3.bf16.msra.mxu1 %v2412_v48 }
 0x626   : > { %2294 = vmatprep.subr.bf16.mxu1 %v2523_v8 }
 0x6eb   : > { %v1038_v21 = vpop.f32.mrb[8].mxu1 }
 0x6ec   : > { %v1039_v22 = vadd.f32 %v2087_v20, %v1038_v21  ;;  %v2258_v23 = vpop.f32.mrb[9].mxu1 }
 0x6ed   : > { %v1041_v24 = vpop.f32.mrb[10].mxu1 }
 0x6ee   : > { %v2259_v25 = vpop.f32.mrb[11].mxu1  ;;  %v1044_v26 = vadd.f32 %v1039_v22, %v2715_v18  ;;  %v2408_v18 = vld [vmem:[%s3028_s10 + $0x8] sm:$0xff]   ;;  %v2103_v22 = vld [vmem:[%s3032_s14] ss:$0 sm:$0xff] }
 0x6ef   : > { %2263 = vmatpush3.bf16.msra.mxu0 %v2408_v18  ;;  %v2104_v24 = vld [vmem:[%s3033_s15] ss:$0 sm:$0xff] }
 0x6f0   : > { %v1047_v27 = vsel %vm642_vm0, %v1044_v26, 0.0  ;;  %2280 = vmatprep.subr.bf16.mxu0 %v2523_v8 }
 0x6f1   : > { %1048 = vadd.xlane.f32.xlu1 %v1047_v27 }
 0x77e   : > { %v1049_v28 = vpop.xlane.xlu1 %1048 }
 0x77f   : > { %v1050_v29 = vmul.f32 0.03125, %v1049_v28  ;;  %v2110_v28 = vld [vmem:[%s3023_s5 + $0x1] ss:$0 sm:$0xff] }
 0x781   : > { %v1051_v30 = vsub.f32 %v1044_v26, %v1050_v29 }
 0x783   : > { %v1052_v31 = vmul.f32 %v1051_v30, %v1051_v30 }
 0x785   : > { %v1053_v33 = vsel %vm642_vm0, %v1052_v31, 0.0 }
 0x786   : > { %1054 = vadd.xlane.f32.xlu0 %v1053_v33 }
 0x813   : > { %v1055_v35 = vpop.xlane.xlu0 %1054 }
 0x814   : > { %v1056_v36 = vmul.f32 0.03125, %v1055_v35 }
 0x816   : > { %v1057_v37 = vadd.f32 1e-12, %v1056_v36 }
 0x818   : > { %2437 = vrsqrt.f32 %v1057_v37 }
 0x822   : > { %v2438_v38 = vpop.eup %2437 }
 0x823   : > { %v1059_v40 = vmul.f32 %v2438_v38, %v1051_v30 }
 0x825   : > { %v1066_v42 = vmul.f32 %v2091_v39, %v1059_v40 }
 0x827   : > { %v1073_v43 = vadd.f32 %v2092_v41, %v1066_v42 }
 0x829   : > { %v1074_v44 = vpack.c.bf16 %v1073_v43, %v1073_v43 }
 0x82b   : > { %2265 = vmatmul.mubr.msk.bf16.vlgmr.msra.gmra.mrb[12].mxu0 %vm642_vm0, %v1074_v44 }
 0x82c   : > { %2284 = vmatprep.mubr.msk.bf16.mxu0 %vm2524_vm1, %v2523_v8  ;;  %2281 = vmatpush3.bf16.msra.mxu0 %v2413_v15 }
 0x82d   : > { %2282 = vmatprep.subr.bf16.mxu0 %v2523_v8 }
 0x830   : > { %2283 = vmatpush3.bf16.msra.mxu0 %v2414_v16 }
 0x831   : > { %2288 = vmatprep.subr.bf16.mxu0 %v2523_v8 }
 0x8fe   : > { %v1135_v50 = vpop.f32.mrb[12].mxu0 }
 0x8ff   : > { %v1136_v51 = vadd.f32 %v2093_v49, %v1135_v50  ;;  %v2266_v52 = vpop.f32.mrb[13].mxu0 }
 0x900   : > { %v1138_v53 = vpop.f32.mrb[14].mxu0 }
 0x901   : > { %v1141_v54 = vmul.f32 %v1136_v51, %v1136_v51  ;;  %v2267_v55 = vpop.f32.mrb[15].mxu0 }
 0x903   : > { %v1142_v56 = vmul.f32 %v1141_v54, %v1136_v51 }
 0x905   : > { %v1143_v57 = vmul.f32 0.044715, %v1142_v56 }
 0x907   : > { %v1144_v58 = vadd.f32 %v1143_v57, %v1136_v51 }
 0x909   : > { %v1145_v59 = vmul.f32 0.7978846, %v1144_v58 }
 0x90b   : > { %2439 = vtanh.f32 %v1145_v59 }
 0x915   : > { %v2440_v60 = vpop.eup %2439 }
 0x916   : > { %v1147_v61 = vadd.f32 1.0, %v2440_v60 }
 0x918   : > { %v1148_v62 = vmul.f32 0.5, %v1147_v61 }
 0x91a   : > { %v1149_v63 = vmul.f32 %v1148_v62, %v1136_v51 }
 0x91c   : > { %v1150_v0 = vpack.c.bf16 %v1149_v63, %v1149_v63 }
 0x91e   : > { %2277 = vmatmul.mubr.msk.bf16.vlgmr.msra.gmra.mrb[12].mxu1 %vm1190_vm5, %v1150_v0 }
 0x91f   : > { %2296 = vmatprep.mubr.msk.bf16.mxu1 %vm2524_vm1, %v2523_v8 }
 0x9f1   : > { %v1228_v2 = vpop.f32.mrb[12].mxu1 }
 0x9f2   : > { %v1229_v3 = vadd.f32 %v2097_v1, %v1228_v2  ;;  %v2278_v4 = vpop.f32.mrb[13].mxu1 }
 0x9f3   : > { %v1231_v5 = vpop.f32.mrb[14].mxu1 }
 0x9f4   : > { %v2279_v6 = vpop.f32.mrb[15].mxu1  ;;  %v1234_v7 = vadd.f32 %v1229_v3, %v1073_v43 }
 0x9f6   : > { %v1237_v9 = vsel %vm642_vm0, %v1234_v7, 0.0 }
 0x9f7   : > { %1238 = vadd.xlane.f32.xlu1 %v1237_v9 }
 0xa84   : > { %v1239_v10 = vpop.xlane.xlu1 %1238 }
 0xa85   : > { %v1240_v11 = vmul.f32 0.03125, %v1239_v10 }
 0xa87   : > { %v1241_v12 = vsub.f32 %v1234_v7, %v1240_v11 }
 0xa89   : > { %v1242_v13 = vmul.f32 %v1241_v12, %v1241_v12 }
 0xa8b   : > { %v1243_v14 = vsel %vm642_vm0, %v1242_v13, 0.0  ;;  %v2416_v13 = vld [vmem:[%s3024_s6 + $0x18] sm:$0xff]  }
 0xa8c   : > { %1244 = vadd.xlane.f32.xlu1 %v1243_v14 }
 0xb19   : > { %v1245_v17 = vpop.xlane.xlu1 %1244 }
 0xb1a   : > { %v1246_v19 = vmul.f32 0.03125, %v1245_v17 }
 0xb1c   : > { %v1247_v20 = vadd.f32 1e-12, %v1246_v19 }
 0xb1e   : > { %2441 = vrsqrt.f32 %v1247_v20 }
 0xb28   : > { %v2442_v21 = vpop.eup %2441 }
 0xb29   : > { %v1249_v23 = vmul.f32 %v2442_v21, %v1241_v12  ;;  %v2415_v12 = vld [vmem:[%s3024_s6 + $0x10] sm:$0xff]  }
 0xb2b   : > { %v1256_v25 = vmul.f32 %v2103_v22, %v1249_v23 }
 0xb2d   : > { %v2839_v26 = vadd.f32 %v2104_v24, %v1256_v25 }
 0xb2f   : > { %v1264_v27 = vpack.c.bf16 %v2839_v26, %v2839_v26 }
 0xb31   : > { %2285 = vmatmul.mubr.msk.bf16.vlgmr.msra.gmra.mrb[16].mxu0 %vm642_vm0, %v1264_v27  ;;  %v2123_v27 = vld [vmem:[%s3025_s7 + $0x1] ss:$0 sm:$0xff] }
 0xb32   : > { %2290 = vmatprep.mubr.msk.bf16.mxu0 %vm2524_vm1, %v2523_v8 }
 0xc04   : > { %v1327_v29 = vpop.f32.mrb[16].mxu0 }
 0xc05   : > { %v1328_v30 = vadd.f32 %v2110_v28, %v1327_v29  ;;  %v2286_v31 = vpop.f32.mrb[17].mxu0 }
 0xc06   : > { %v1330_v33 = vpop.f32.mrb[18].mxu0 }
 0xc07   : > { %v1333_v34 = vpack.c.bf16 %v1328_v30, %v1328_v30  ;;  %v2287_v18 = vpop.f32.mrb[19].mxu0 }
 0xc09   : > { %1447 = vrot.lane.b32.xlu1 %v1333_v34, %s2527_s25  ;;  %1335 = vrot.lane.b32.xlu0 %v1333_v34, %s2526_s28  ;;  %s3066_s28 = smov 64   ;;  %s3067_s25 = smov 48  }
 0xc0d   : > { %1445 = vrot.lane.b32.xlu1 %v1333_v34, %s3065_s26  ;;  %s1995_s26 = scalar_lea.sflag [#allocation3], %s629_s29 }
 0xc7b   : > { %v1336_v35 = vpop.permute.xlu0 %1335  ;;  %v1448_v37 = vpop.permute.xlu1 %1447 }
 0xc7c   : > { %v1341_v36 = vsel %vm743_vm2, %v1336_v35, 0  ;;  %v1453_v38 = vsel %vm743_vm2, %v1448_v37, 0 }
 0xc7d   : > { %2289 = vmatpush3.bf16.xpose.msra.mxu0 %v1341_v36 }
 0xc7e   : > { %2300 = vmatprep.subr.bf16.mxu0 %v2523_v8 }
 0xc7f   : > { %v1446_v39 = vpop.permute.xlu1 %1445 }
 0xc84   : > { %2291 = vmatmul.mubr.msk.bf16.vlgmr.msra.gmra.mrb[20].mxu0 %vm743_vm2, %v1333_v34 }
 0xc85   : > { %2301 = vmatpush3.bf16.xpose.msra.mxu0 %v1453_v38  ;;  %2302 = vmatprep.mubr.msk.bf16.mxu0 %vm2524_vm1, %v2523_v8 }
 0xc86   : > { %2312 = vmatprep.subr.bf16.mxu0 %v2523_v8 }
 0xc8c   : > { %2303 = vmatmul.mubr.msk.bf16.vlgmr.msra.gmra.mrb[24].mxu0 %vm743_vm2, %v1446_v39 }
 0xc8d   : > { %2316 = vmatprep.mubr.msk.bf16.mxu0 %vm2524_vm1, %v2523_v8  ;;  %2313 = vmatpush3.bf16.msra.mxu0 %v2415_v12 }
 0xc8e   : > { %2314 = vmatprep.subr.bf16.mxu0 %v2523_v8 }
 0xc91   : > { %2315 = vmatpush3.bf16.msra.mxu0 %v2416_v13 }
 0xc92   : > { %2328 = vmatprep.subr.bf16.mxu0 %v2523_v8 }
 0xd57   : > { %v1377_v40 = vpop.f32.mrb[20].mxu0 }
 0xd58   : > { %v1383_v41 = vmul.f32 0.25, %v1377_v40  ;;  %v2292_v42 = vpop.f32.mrb[21].mxu0  ;;  %v2417_v40 = vld [vmem:[%s3028_s10 + $0x10] sm:$0xff]  }
 0xd59   : > { %v1380_v43 = vpop.f32.mrb[22].mxu0 }
 0xd5a   : > { %v2293_v44 = vpop.f32.mrb[23].mxu0  ;;  %v1384_v45 = vadd.f32 %v2742_v32, %v1383_v41  ;;  %v2418_v41 = vld [vmem:[%s3028_s10 + $0x18] sm:$0xff]  }
 0xd5c   : > { %v1385_v46 = vsel %vm798_vm3, %v1384_v45, -inf }
 0xd5d   : > { %1386 = vmax.xlane.f32.xlu0 %v1385_v46 }
 0xd5f   : > { %v1489_v47 = vpop.f32.mrb[24].mxu0 }
 0xd60   : > { %v1495_v48 = vmul.f32 0.25, %v1489_v47  ;;  %v2304_v49 = vpop.f32.mrb[25].mxu0  ;;  %v2130_v47 = vld [vmem:[%s3027_s9 + $0x1] ss:$0 sm:$0xff] }
 0xd61   : > { %v1492_v50 = vpop.f32.mrb[26].mxu0 }
 0xd62   : > { %v2305_v51 = vpop.f32.mrb[27].mxu0  ;;  %v1496_v52 = vadd.f32 %v2742_v32, %v1495_v48 }
 0xd63   : > { %v2419_v51 = vld [vmem:[%s3030_s12 + $0x20] sm:$0xff]  }
 0xd64   : > { %v1497_v53 = vsel %vm798_vm3, %v1496_v52, -inf }
 0xd65   : > { %1498 = vmax.xlane.f32.xlu1 %v1497_v53  ;;  %v2421_v53 = vld [vmem:[%s3030_s12 + $0x30] sm:$0xff]  }
 0xd76   : > { %1397 = vrot.lane.b32.xlu1 %v1333_v34, %s3066_s28  ;;  %s2531_s28 = smov [#allocation2]  }
 0xd77   : > { %s2463_s3 = sshll.u32 %s2531_s28, 4  ;;  %s2464_s3 = int_to_ptr.vmem [resolvable:$false] %s2463_s3 }
 0xd78   : > { %s2465_s21 = scalar_lea.vmem %s2464_s3, 32  ;;  %p2466_p0 = scmp.lt.s32.totalorder %s2978_s23, %s2464_s3 }
 0xdea   : > { %v1387_v54 = vpop.xlane.xlu0 %1386 }
 0xdeb   : > { %v1388_v55 = vsub.f32 %v1384_v45, %v1387_v54  ;;  %v2129_v45 = vld [vmem:[%s3026_s8 + $0x1] ss:$0 sm:$0xff]  ;;  %v2422_v54 = vld [vmem:[%s3030_s12 + $0x38] sm:$0xff]  }
 0xded   : > { %v1389_v56 = vmul.f32 1.442695, %v1388_v55  ;;  %v2136_v55 = vld [vmem:[%s3029_s11 + $0x1] ss:$0 sm:$0xff] }
 0xdef   : > { %2443 = vpow2.f32 %v1389_v56 }
 0xdf2   : > { %v1499_v57 = vpop.xlane.xlu1 %1498 }
 0xdf3   : > { %v1500_v58 = vsub.f32 %v1496_v52, %v1499_v57  ;;  %v2420_v52 = vld [vmem:[%s3030_s12 + $0x28] sm:$0xff]  }
 0xdf5   : > { %v1501_v59 = vmul.f32 1.442695, %v1500_v58 }
 0xdf6   : > { %v1398_v60 = vpop.permute.xlu1 %1397 }
 0xdf7   : > { %2445 = vpow2.f32 %v1501_v59  ;;  %v1403_v61 = vsel %vm816_vm4, %v1398_v60, 0 }
 0xdf8   : > { %2295 = vmatpush3.bf16.msra.mxu1 %v1403_v61 }
 0xdf9   : > { %v2444_v62 = vpop.eup %2443  ;;  %2306 = vmatprep.subr.bf16.mxu1 %v2523_v8 }
 0xdfa   : > { %v1391_v32 = vsel %vm798_vm3, %v2444_v62, 0.0 }
 0xdfb   : > { %1392 = vadd.xlane.f32.xlu0 %v1391_v32 }
 0xe01   : > { %v2446_v63 = vpop.eup %2445 }
 0xe02   : > { %v1503_v0 = vsel %vm798_vm3, %v2446_v63, 0.0 }
 0xe03   : > { %1504 = vadd.xlane.f32.xlu0 %v1503_v0 }
 0xe19   : > { %1509 = vrot.lane.b32.xlu0 %v1333_v34, %s3067_s25  ;;  %s2167_s25 = sshll.u32 %s2658_s2, 4  ;;  %s2459_s2 = scalar_lea.vmem %s2978_s23, 16 }
 0xe1a   : > { %p2460_p11 = scmp.ne.s32.totalorder %s2978_s23, %s2459_s2  ;;  %p2467_p1 = scmp.lt.s32.totalorder %s2465_s21, %s2459_s2 }
 0xe1c   : > { %p2461_p12 = pnand %p2460_p11, %p2675_p5  ;;  %p2468_p2 = por %p2467_p1, %p2466_p0 }
 0xe1e   : > { %p2462_p13 = pneg %p2461_p12 }
 0xe20   : > { %p2469_p3 = pnand %p2468_p2, %p2462_p13 }
 0xe88   : > { %v1393_v1 = vpop.xlane.xlu0 %1392 }
 0xe89   : > { %2447 = vrcp.f32 %v1393_v1 }
 0xe90   : > { %v1505_v2 = vpop.xlane.xlu0 %1504 }
 0xe91   : > { %2449 = vrcp.f32 %v1505_v2 }
 0xe93   : > { %v2448_v3 = vpop.eup %2447 }
 0xe94   : > { %v1395_v4 = vmul.f32 %v2448_v3, %v2444_v62  ;;  %v1510_v5 = vpop.permute.xlu0 %1509 }
 0xe95   : > { %v1515_v7 = vsel %vm816_vm4, %v1510_v5, 0 }
 0xe96   : > { %v1396_v6 = vpack.c.bf16 %v1395_v4, %v1395_v4 }
 0xe98   : > { %2297 = vmatmul.mubr.msk.bf16.vlgmr.msra.gmra.mrb[16].mxu1 %vm798_vm3, %v1396_v6  ;;  %v2149_v6 = vld [vmem:[%s3031_s13 + $0x1] ss:$0 sm:$0xff] }
 0xe99   : > { %2307 = vmatpush3.bf16.msra.mxu1 %v1515_v7  ;;  %2308 = vmatprep.mubr.msk.bf16.mxu1 %vm2524_vm1, %v2523_v8 }
 0xe9a   : > { %2320 = vmatprep.subr.bf16.mxu1 %v2523_v8 }
 0xe9b   : > { %v2450_v9 = vpop.eup %2449 }
 0xe9c   : > { %v1507_v10 = vmul.f32 %v2450_v9, %v2446_v63 }
 0xe9e   : > { %v1508_v11 = vpack.c.bf16 %v1507_v10, %v1507_v10 }
 0xea0   : > { %2309 = vmatmul.mubr.msk.bf16.vlgmr.msra.gmra.mrb[20].mxu1 %vm798_vm3, %v1508_v11 }
 0xea1   : > { %2324 = vmatprep.mubr.msk.bf16.mxu1 %vm2524_vm1, %v2523_v8  ;;  %2321 = vmatpush3.bf16.msra.mxu1 %v2417_v40 }
 0xea2   : > { %2322 = vmatprep.subr.bf16.mxu1 %v2523_v8 }
 0xea5   : > { %2323 = vmatpush3.bf16.msra.mxu1 %v2418_v41 }
 0xea6   : > { %2340 = vmatprep.subr.bf16.mxu1 %v2523_v8 }
 0xf6b   : > { %v1439_v14 = vpop.f32.mrb[16].mxu1 }
 0xf6c   : > { %v2298_v15 = vpop.f32.mrb[17].mxu1 }
 0xf6d   : > { %v1442_v16 = vpop.f32.mrb[18].mxu1 }
 0xf6e   : > { %v2299_v17 = vpop.f32.mrb[19].mxu1 }
 0xf73   : > { %v1551_v19 = vpop.f32.mrb[20].mxu1 }
 0xf74   : > { %1558 = vrot.lane.b32.xlu1 %v1551_v19, %s3068_s0  ;;  %v2310_v20 = vpop.f32.mrb[21].mxu1  ;;  %s2976_s0 = scalar_lea.hbm %s3038_s20, %s2167_s25 }
 0xf75   : > { %v1554_v21 = vpop.f32.mrb[22].mxu1 }
 0xf76   : > { %v2311_v22 = vpop.f32.mrb[23].mxu1  ;;  %v2423_v21 = vld [vmem:[%s3034_s16] sm:$0xff]  }
 0xf77   : > { %v2424_v22 = vld [vmem:[%s3034_s16 + $0x8] sm:$0xff]  }
 0xfe6   : > { %v1559_v23 = vpop.permute.xlu1 %1558 }
 0xfe7   : > { %v1561_v24 = vsel %vm743_vm2, %v1439_v14, %v1559_v23 }
 0xfe8   : > { %v1562_v25 = vpack.c.bf16 %v1561_v24, %v1561_v24 }
 0xfea   : > { %2317 = vmatmul.mubr.msk.bf16.vlgmr.msra.gmra.mrb[28].mxu0 %vm642_vm0, %v1562_v25 }
 0xfeb   : > { %2336 = vmatprep.mubr.msk.bf16.mxu0 %vm2524_vm1, %v2523_v8  ;;  %2329 = vmatpush3.bf16.msra.mxu0 %v2419_v51 }
 0xfec   : > { %2330 = vmatprep.subr.bf16.mxu0 %v2523_v8 }
 0xfef   : > { %2331 = vmatpush3.bf16.msra.mxu0 %v2420_v52 }
 0xff0   : > { %2332 = vmatprep.subr.bf16.mxu0 %v2523_v8 }
 0xff3   : > { %2333 = vmatpush3.bf16.msra.mxu0 %v2421_v53 }
 0xff4   : > { %2334 = vmatprep.subr.bf16.mxu0 %v2523_v8 }
 0xff7   : > { %2335 = vmatpush3.bf16.msra.mxu0 %v2422_v54 }
0x10bd   : > { %v1625_v28 = vpop.f32.mrb[28].mxu0 }
0x10be   : > { %v1626_v29 = vadd.f32 %v2123_v27, %v1625_v28  ;;  %v2318_v30 = vpop.f32.mrb[29].mxu0  ;;  %v2157_v28 = vld [vmem:[%s3032_s14 + $0x1] ss:$0 sm:$0xff] }
0x10bf   : > { %v1628_v31 = vpop.f32.mrb[30].mxu0  ;;  %v2158_v30 = vld [vmem:[%s3033_s15 + $0x1] ss:$0 sm:$0xff] }
0x10c0   : > { %v2319_v33 = vpop.f32.mrb[31].mxu0  ;;  %v1631_v34 = vadd.f32 %v1626_v29, %v2839_v26 }
0x10c2   : > { %v1636_v18 = vsel %vm642_vm0, %v1631_v34, 0.0 }
0x10c3   : > { %1637 = vadd.xlane.f32.xlu1 %v1636_v18  ;;  %v2425_v18 = vld [vmem:[%s3036_s18] sm:$0xff]  }
0x1150   : > { %v1638_v35 = vpop.xlane.xlu1 %1637 }
0x1151   : > { %v1639_v36 = vmul.f32 0.03125, %v1638_v35  ;;  %v2426_v35 = vld [vmem:[%s3036_s18 + $0x8] sm:$0xff]  }
0x1153   : > { %v1640_v37 = vsub.f32 %v1631_v34, %v1639_v36  ;;  %v2159_v36 = vld [vmem:[%s3035_s17] ss:$0 sm:$0xff] }
0x1155   : > { %v1641_v38 = vmul.f32 %v1640_v37, %v1640_v37 }
0x1157   : > { %v1642_v39 = vsel %vm642_vm0, %v1641_v38, 0.0 }
0x1158   : > { %1643 = vadd.xlane.f32.xlu0 %v1642_v39 }
0x11e5   : > { %v1644_v26 = vpop.xlane.xlu0 %1643 }
0x11e6   : > { %v1645_v42 = vmul.f32 0.03125, %v1644_v26 }
0x11e8   : > { %v1646_v43 = vadd.f32 1e-12, %v1645_v42 }
0x11ea   : > { %2451 = vrsqrt.f32 %v1646_v43 }
0x11f4   : > { %v2452_v44 = vpop.eup %2451 }
0x11f5   : > { %v1648_v46 = vmul.f32 %v2452_v44, %v1640_v37 }
0x11f7   : > { %v1655_v48 = vmul.f32 %v2129_v45, %v1648_v46 }
0x11f9   : > { %v1662_v49 = vadd.f32 %v2130_v47, %v1655_v48 }
0x11fb   : > { %v1663_v50 = vpack.c.bf16 %v1662_v49, %v1662_v49 }
0x11fd   : > { %2325 = vmatmul.mubr.msk.bf16.vlgmr.msra.gmra.mrb[24].mxu1 %vm642_vm0, %v1663_v50 }
0x11fe   : > { %2344 = vmatprep.mubr.msk.bf16.mxu1 %vm2524_vm1, %v2523_v8  ;;  %2341 = vmatpush3.bf16.msra.mxu1 %v2423_v21 }
0x11ff   : > { %2342 = vmatprep.subr.bf16.mxu1 %v2523_v8 }
0x1202   : > { %2343 = vmatpush3.bf16.msra.mxu1 %v2424_v22 }
0x1203   : > { %2348 = vmatprep.subr.bf16.mxu1 %v2523_v8 }
0x12d0   : > { %v1726_v56 = vpop.f32.mrb[24].mxu1 }
0x12d1   : > { %v1727_v57 = vadd.f32 %v2136_v55, %v1726_v56  ;;  %v2326_v58 = vpop.f32.mrb[25].mxu1 }
0x12d2   : > { %v1729_v59 = vpop.f32.mrb[26].mxu1 }
0x12d3   : > { %v1732_v60 = vmul.f32 %v1727_v57, %v1727_v57  ;;  %v2327_v61 = vpop.f32.mrb[27].mxu1 }
0x12d5   : > { %v1733_v62 = vmul.f32 %v1732_v60, %v1727_v57 }
0x12d7   : > { %v1734_v32 = vmul.f32 0.044715, %v1733_v62 }
0x12d9   : > { %v1735_v63 = vadd.f32 %v1734_v32, %v1727_v57 }
0x12db   : > { %v1736_v0 = vmul.f32 0.7978846, %v1735_v63 }
0x12dd   : > { %2453 = vtanh.f32 %v1736_v0 }
0x12e7   : > { %v2454_v1 = vpop.eup %2453 }
0x12e8   : > { %v1738_v2 = vadd.f32 1.0, %v2454_v1 }
0x12ea   : > { %v1739_v3 = vmul.f32 0.5, %v1738_v2 }
0x12ec   : > { %v1740_v4 = vmul.f32 %v1739_v3, %v1727_v57 }
0x12ee   : > { %v1741_v5 = vpack.c.bf16 %v1740_v4, %v1740_v4 }
0x12f0   : > { %2337 = vmatmul.mubr.msk.bf16.vlgmr.msra.gmra.mrb[32].mxu0 %vm1190_vm5, %v1741_v5 }
0x13c3   : > { %v1820_v7 = vpop.f32.mrb[32].mxu0 }
0x13c4   : > { %v1821_v9 = vadd.f32 %v2149_v6, %v1820_v7  ;;  %v2338_v10 = vpop.f32.mrb[33].mxu0 }
0x13c5   : > { %v1823_v11 = vpop.f32.mrb[34].mxu0 }
0x13c6   : > { %v2339_v12 = vpop.f32.mrb[35].mxu0  ;;  %v1826_v13 = vadd.f32 %v1821_v9, %v1662_v49 }
0x13c8   : > { %v1831_v14 = vsel %vm642_vm0, %v1826_v13, 0.0 }
0x13c9   : > { %1832 = vadd.xlane.f32.xlu0 %v1831_v14 }
0x1456   : > { %v1833_v15 = vpop.xlane.xlu0 %1832 }
0x1457   : > { %v1834_v16 = vmul.f32 0.03125, %v1833_v15 }
0x1459   : > { %v1835_v17 = vsub.f32 %v1826_v13, %v1834_v16 }
0x145b   : > { %v1836_v19 = vmul.f32 %v1835_v17, %v1835_v17 }
0x145d   : > { %v1837_v20 = vsel %vm642_vm0, %v1836_v19, 0.0 }
0x145e   : > { %1838 = vadd.xlane.f32.xlu1 %v1837_v20 }
0x14eb   : > { %v1839_v23 = vpop.xlane.xlu1 %1838 }
0x14ec   : > { %v1840_v24 = vmul.f32 0.03125, %v1839_v23 }
0x14ee   : > { %v1841_v25 = vadd.f32 1e-12, %v1840_v24 }
0x14f0   : > { %2455 = vrsqrt.f32 %v1841_v25 }
0x14fa   : > { %v2456_v27 = vpop.eup %2455 }
0x14fb   : > { %v1843_v29 = vmul.f32 %v2456_v27, %v1835_v17 }
0x14fd   : > { %v1850_v31 = vmul.f32 %v2157_v28, %v1843_v29 }
0x14ff   : > { %v1857_v33 = vadd.f32 %v2158_v30, %v1850_v31 }
0x1501   : > { %v1858_v34 = vpack.c.bf16 %v1857_v33, %v1857_v33 }
0x1503   : > { %2345 = vmatmul.mubr.msk.bf16.vlgmr.msra.gmra.mrb[28].mxu1 %vm642_vm0, %v1858_v34 }
0x1504   : > { %2352 = vmatprep.mubr.msk.bf16.mxu1 %vm2524_vm1, %v2523_v8  ;;  %2349 = vmatpush3.bf16.msra.mxu1 %v2425_v18 }
0x1505   : > { %2350 = vmatprep.subr.bf16.mxu1 %v2523_v8  ;;  %v2163_v8 = vld [vmem:[%s3037_s19] ss:$0 sm:$0xff] }
0x1508   : > { %2351 = vmatpush3.bf16.msra.mxu1 %v2426_v35 }
0x15d6   : > { %v1919_v37 = vpop.f32.mrb[28].mxu1 }
0x15d7   : > { %v1920_v38 = vadd.f32 %v2159_v36, %v1919_v37  ;;  %v2346_v39 = vpop.f32.mrb[29].mxu1 }
0x15d8   : > { %v1922_v40 = vpop.f32.mrb[30].mxu1 }
0x15d9   : > { %2457 = vtanh.f32 %v1920_v38  ;;  %v2347_v41 = vpop.f32.mrb[31].mxu1 }
0x15e3   : > { %v2458_v26 = vpop.eup %2457 }
0x15e4   : > { %v1926_v42 = vpack.c.bf16 %v2458_v26, %v2458_v26 }
0x15e6   : > { %2353 = vmatmul.mubr.msk.bf16.vlgmr.msra.gmra.mrb[32].mxu1 %vm642_vm0, %v1926_v42 }
0x16b9   : > { %v1987_v43 = vpop.f32.mrb[32].mxu1 }
0x16ba   : > { %v1988_v44 = vadd.f32 %v2163_v8, %v1987_v43  ;;  %v2354_v45 = vpop.f32.mrb[33].mxu1 }
0x16bb   : > { %v1990_v46 = vpop.f32.mrb[34].mxu1 }
0x16bc   : > { %1993 = vst [vmem:[%s630_s30] sm:$0x1] %v1988_v44  ;;  %v2355_v47 = vpop.f32.mrb[35].mxu1 }
0x16bd   : > { %2472 = shalt.err (!%p2469_p3)
}
0x16be   : > { %s2473_s29 = scalar_lea.hbm %s2976_s0, 16  ;;  %s2477_s27 = scalar_lea.hbm %s3038_s20, 32 }
0x16bf   : > { %p2474_p4 = scmp.ne.s32.totalorder %s2976_s0, %s2473_s29  ;;  %p2478_p9 = scmp.lt.u32.totalorder %s2976_s0, %s3038_s20 }
0x16c0   : > { %p2479_p10 = scmp.lt.u32.totalorder %s2477_s27, %s2473_s29  ;;  %p2481_p12 = scmp.lt.u32.totalorder %s2473_s29, %s2976_s0 }
0x16c1   : > { %p2475_p7 = pnand %p2474_p4, %p2675_p5 }
0x16c2   : > { %p2480_p11 = por %p2479_p10, %p2478_p9 }
0x16c3   : > { %p2476_p8 = pneg %p2475_p7 }
0x16c4   : > { %p2482_p13 = por %p2481_p12, %p2480_p11 }
0x16c6   : > { %p2483_p0 = pnand %p2482_p13, %p2476_p8 }
0x16c8   : > { %2486 = shalt.err (!%p2483_p0)
}
0x16c9   : > { %2356 = dma.vmem_to_hbm [thread:$0]  (%p2675_p5), %s2978_s23, 16, %s2976_s0, %s1995_s26  }
0x16ca PF: > { %p2362_p1 = scmp.ge.s32.totalorder %s2521_s24, 2  ;;  %s2019_s21 = sand.u32 1, %s2509_s1  }
0x16cb   : > { %s2020_s25 = scalar_lea.sflag [#allocation3], %s2019_s21 }
0x16cc   : > { %p2359_p2 = pnand %p2362_p1, %p2679_p6 }
0x16ce   : > { %2504 = dma.done.wait (!%p2359_p2), %s2020_s25, 16  }
0x16cf   : > { %2506 = vsyncadd (!%p2359_p2), %s2020_s25, 4294967280  ;;  %s3070_s24 = sld [smem:[#allocation6_spill]]  ;;  %s3071_s29 = sld [smem:[#allocation5_spill]] }
0x16d0   : > { %s3072_s23 = sld [smem:[#allocation7_spill]]  ;;  %s3073_s1 = smov %s2513_s22 }
0x16d5   : > { %p30_p3 = scmp.ge.s32.totalorder %s3070_s24, 4   ;;  %s3074_s22 = smov %s3071_s29 }
0x16d7   :  { %32 = sbr.rel (!%p30_p3) target bundleno = 9 (0x9), region = 150 }
0x16de   :  { %2024 = vsyncpa [#allocation3], 1 }
0x16df   :  { %2026 = vsyncpa [#allocation3 + $0x1], 1 }

</bundles_post_ra>
